<compile_context>
chip_gen: v7x
topology: tpu7x:2x2x1
jax: 0.10.0
libtpu: 0.0.40
codegen_flags: <defaults>
</compile_context>

<pallas_src>
import jax
import jax.numpy as jnp
from jax.experimental import pallas as pl
from jax.experimental.pallas import tpu as pltpu

MAX_SEQ = 700
DDIM = 512
NEG_SLOPE = 0.01            # torch.nn.LeakyReLU default


def _leaky_relu(v):
    return jnp.where(v >= 0, v, NEG_SLOPE * v)


def _round_up(n, m):
    return -(-n // m) * m


def _pick_batch_tile(B, max_tile=512):
    """Batch tile: multiple of 8, <= max_tile.  Tiny batches get one snug tile;
    larger batches use 128-multiples, minimizing batch padding, preferring >= 2 grid
    steps (so both v7x TensorCores get work) and then the largest tile (fewest
    pipeline steps)."""
    if B <= 256:
        return _round_up(max(B, 1), 8)
    best = None
    for t in range(128, max_tile + 1, 128):
        n_tiles = -(-B // t)
        key = (n_tiles * t, 0 if n_tiles >= 2 else 1, -t)
        if best is None or key < best[0]:
            best = (key, t)
    return best[1]


def discriminator_kernel(
    x_ref,                    # (T, 700) f32
    w1_ref, b1_ref,           # (700, 512) bf16, (1, 512) f32
    w2_ref, b2_ref,           # (512, 512) bf16, (1, 512) f32
    w3_ref, b3_ref,           # (512, 512) bf16, (1, 512) f32
    w4_ref, b4_ref,           # (1, 512) f32 lane-dense row, (1, 1) f32 in SMEM
    out_ref, h1_ref, h2_ref, h3_ref,
):
    # fc1: bf16 MXU operands (ragged K=700 — Mosaic masks the lane padding),
    # f32 accumulation, bias-add + LeakyReLU in f32.
    xb = x_ref[...].astype(jnp.bfloat16)
    h1 = _leaky_relu(
        jnp.dot(xb, w1_ref[...], preferred_element_type=jnp.float32) + b1_ref[...])
    h1b = h1.astype(jnp.bfloat16)

    h2 = _leaky_relu(
        jnp.dot(h1b, w2_ref[...], preferred_element_type=jnp.float32) + b2_ref[...])
    h2b = h2.astype(jnp.bfloat16)

    h3 = _leaky_relu(
        jnp.dot(h2b, w3_ref[...], preferred_element_type=jnp.float32) + b3_ref[...])

    # fc4 has N=1: VPU multiply + XLU lane reduction instead of a nearly-empty MXU
    # pass (a 512x1 MXU pass would waste almost the whole array and lane-pad to 128).
    out_ref[...] = jnp.sum(h3 * w4_ref[...], axis=-1, keepdims=True) + b4_ref[0, 0]

    h1_ref[...] = h1.astype(h1_ref.dtype)
    h2_ref[...] = h2.astype(h2_ref.dtype)
    h3_ref[...] = h3.astype(h3_ref.dtype)


def prepare_params(params):
    """One-time conversion of f32 (in,out)-layout Linear params into kernel-ready
    tensors (hoisted out of the per-call forward path): bf16 matmul weights,
    f32 biases, fc4 weight as a lane-dense (1, DDIM) row, fc4 bias as a (1, 1)
    SMEM scalar."""
    (w1, b1), (w2, b2), (w3, b3), (w4, b4) = params
    return (
        w1.astype(jnp.bfloat16), b1.reshape(1, DDIM).astype(jnp.float32),
        w2.astype(jnp.bfloat16), b2.reshape(1, DDIM).astype(jnp.float32),
        w3.astype(jnp.bfloat16), b3.reshape(1, DDIM).astype(jnp.float32),
        w4.reshape(1, DDIM).astype(jnp.float32),
        b4.reshape(1, 1).astype(jnp.float32),
    )


def discriminator_forward(x, kernel_params, *, batch_tile=None,
                          hidden_dtype=jnp.bfloat16):
    """x: (B, MAX_SEQ) f32.  kernel_params: output of prepare_params().
    Returns (out (B,), hidden1, hidden2, hidden3); hiddens in hidden_dtype."""
    B, F = x.shape
    assert F == MAX_SEQ
    w1, b1, w2, b2, w3, b3, w4row, b4 = kernel_params

    tile = _pick_batch_tile(B) if batch_tile is None else batch_tile
    assert tile % 8 == 0, "batch tile must be a multiple of 8 (sublane)"
    n_tiles = pl.cdiv(B, tile)
    Bp = n_tiles * tile
    # batch-only pad (skipped entirely when B divides the tile); no feature pad.
    xp = x if Bp == B else jnp.pad(x, ((0, Bp - B), (0, 0)))

    act_spec = pl.BlockSpec((tile, MAX_SEQ), lambda i: (i, 0))
    # constant block index -> weights stay resident across grid steps (no re-fetch)
    res_spec = lambda shp: pl.BlockSpec(shp, lambda i: (0, 0))

    out_shapes = (
        jax.ShapeDtypeStruct((Bp, 1), jnp.float32),      # fc4 output
        jax.ShapeDtypeStruct((Bp, DDIM), hidden_dtype),  # hidden1
        jax.ShapeDtypeStruct((Bp, DDIM), hidden_dtype),  # hidden2
        jax.ShapeDtypeStruct((Bp, DDIM), hidden_dtype),  # hidden3
    )
    out_specs = (
        pl.BlockSpec((tile, 1), lambda i: (i, 0)),
        pl.BlockSpec((tile, DDIM), lambda i: (i, 0)),
        pl.BlockSpec((tile, DDIM), lambda i: (i, 0)),
        pl.BlockSpec((tile, DDIM), lambda i: (i, 0)),
    )

    hid_bytes = jnp.dtype(hidden_dtype).itemsize
    flops = 2 * Bp * (MAX_SEQ * DDIM + 2 * DDIM * DDIM + DDIM)
    bytes_accessed = (
        Bp * MAX_SEQ * 4                              # x (f32 in, cast in-kernel)
        + 2 * (MAX_SEQ * DDIM + 2 * DDIM * DDIM)      # bf16 weights
        + 4 * (4 * DDIM + 1)                          # biases + w4 row + b4
        + Bp * 4                                      # out
        + 3 * Bp * DDIM * hid_bytes                   # hidden writeback
    )

    out, h1, h2, h3 = pl.pallas_call(
        discriminator_kernel,
        out_shape=out_shapes,
        grid=(n_tiles,),
        in_specs=[
            act_spec,
            res_spec((MAX_SEQ, DDIM)), res_spec((1, DDIM)),
            res_spec((DDIM, DDIM)), res_spec((1, DDIM)),
            res_spec((DDIM, DDIM)), res_spec((1, DDIM)),
            res_spec((1, DDIM)),
            pl.BlockSpec(memory_space=pltpu.MemorySpace.SMEM),   # b4 scalar
        ],
        out_specs=out_specs,
        compiler_params=pltpu.CompilerParams(
            dimension_semantics=("parallel",),
            vmem_limit_bytes=40 * 1024 * 1024,
        ),
        cost_estimate=pl.CostEstimate(
            flops=int(flops), transcendentals=0, bytes_accessed=int(bytes_accessed)),
    )(xp, w1, b1, w2, b2, w3, b3, w4row, b4)

    return out[:B, 0], h1[:B], h2[:B], h3[:B]


def init_params(key):
    """Deterministic init matching PyTorch nn.Linear default (uniform +/- 1/sqrt(fan_in)).
    Weights stored as (in, out)."""
    def linear(key, fan_in, fan_out):
        kw, kb = jax.random.split(key)
        bound = 1.0 / (fan_in ** 0.5)
        w = jax.random.uniform(kw, (fan_in, fan_out), jnp.float32, -bound, bound)
        b = jax.random.uniform(kb, (1, fan_out), jnp.float32, -bound, bound)
        return w, b

    k1, k2, k3, k4 = jax.random.split(key, 4)
    return (
        linear(k1, MAX_SEQ, DDIM),
        linear(k2, DDIM, DDIM),
        linear(k3, DDIM, DDIM),
        linear(k4, DDIM, 1),
    )


def reference_forward(x, params, *, matmul_dtype=jnp.float32):
    """Pure-JAX reference.  With matmul_dtype=bfloat16 it mirrors the kernel's
    operand rounding (accumulation stays f32), so a tight-ish tolerance is valid."""
    (w1, b1), (w2, b2), (w3, b3), (w4, b4) = params

    def dot(a, w):
        return jnp.dot(a.astype(matmul_dtype), w.astype(matmul_dtype),
                       preferred_element_type=jnp.float32)

    h1 = _leaky_relu(dot(x, w1) + b1)
    h2 = _leaky_relu(dot(h1, w2) + b2)
    h3 = _leaky_relu(dot(h2, w3) + b3)
    out = jnp.sum(h3 * w4.reshape(1, -1), axis=-1) + b4.reshape(-1)
    return out, h1, h2, h3


if __name__ == "__main__":
    key = jax.random.PRNGKey(0)
    kp, kx, kx2 = jax.random.split(key, 3)

    params = init_params(kp)
    kparams = prepare_params(params)   # hoisted one-time weight prep

    # Case 1: small batch, single tile (exercises the batch-remainder padding).
    B = 6
    x = jax.random.normal(kx, (B, MAX_SEQ), jnp.float32)
    out, h1, h2, h3 = discriminator_forward(x, kparams)
    jax.block_until_ready((out, h1, h2, h3))

    ro, r1, r2, r3 = reference_forward(x, params, matmul_dtype=jnp.bfloat16)
    assert out.shape == (B,) and out.dtype == jnp.float32
    assert h1.shape == (B, DDIM) and h2.shape == (B, DDIM) and h3.shape == (B, DDIM)
    assert jnp.allclose(out, ro, atol=2e-2, rtol=2e-2)
    assert jnp.allclose(h1.astype(jnp.float32), r1, atol=2e-2, rtol=2e-2)
    assert jnp.allclose(h2.astype(jnp.float32), r2, atol=2e-2, rtol=2e-2)
    assert jnp.allclose(h3.astype(jnp.float32), r3, atol=2e-2, rtol=2e-2)

    # Case 2: small multi-tile grid (forced tile=8 -> grid of 3, pipelined path).
    B2 = 20
    x2 = jax.random.normal(kx2, (B2, MAX_SEQ), jnp.float32)
    out2, _, _, h3_2 = discriminator_forward(x2, kparams, batch_tile=8)
    jax.block_until_ready((out2, h3_2))

    ro2, _, _, r3_2 = reference_forward(x2, params, matmul_dtype=jnp.bfloat16)
    assert out2.shape == (B2,)
    assert jnp.allclose(out2, ro2, atol=2e-2, rtol=2e-2)
    assert jnp.allclose(h3_2.astype(jnp.float32), r3_2, atol=2e-2, rtol=2e-2)

    print("KERNEL_OK")
</pallas_src>

<mosaic_0001>
module attributes {stable_mosaic.version = 11 : i64} {
  func.func @discriminator_kernel(%arg0: i32, %arg1: memref<8x700xf32, #tpu.memory_space<vmem>>, %arg2: memref<700x512xbf16, #tpu.memory_space<vmem>>, %arg3: memref<1x512xf32, #tpu.memory_space<vmem>>, %arg4: memref<512x512xbf16, #tpu.memory_space<vmem>>, %arg5: memref<1x512xf32, #tpu.memory_space<vmem>>, %arg6: memref<512x512xbf16, #tpu.memory_space<vmem>>, %arg7: memref<1x512xf32, #tpu.memory_space<vmem>>, %arg8: memref<1x512xf32, #tpu.memory_space<vmem>>, %arg9: memref<1x1xf32, #tpu.memory_space<smem>>, %arg10: memref<8x1xf32, #tpu.memory_space<vmem>>, %arg11: memref<8x512xbf16, #tpu.memory_space<vmem>>, %arg12: memref<8x512xbf16, #tpu.memory_space<vmem>>, %arg13: memref<8x512xbf16, #tpu.memory_space<vmem>>) attributes {dimension_semantics = [#tpu.dimension_semantics<parallel>], iteration_bounds = array<i64: 1>, scalar_prefetch = 0 : i64, scratch_operands = 0 : i64, tpu.core_type = #tpu.core_type<tc>, window_params = [{transform_indices = @transform_0, window_bounds = array<i64: 8, 700>}, {pipeline_mode = #tpu.pipeline_mode<synchronous>, transform_indices = @transform_1, window_bounds = array<i64: 700, 512>}, {pipeline_mode = #tpu.pipeline_mode<synchronous>, transform_indices = @transform_2, window_bounds = array<i64: 1, 512>}, {pipeline_mode = #tpu.pipeline_mode<synchronous>, transform_indices = @transform_3, window_bounds = array<i64: 512, 512>}, {pipeline_mode = #tpu.pipeline_mode<synchronous>, transform_indices = @transform_4, window_bounds = array<i64: 1, 512>}, {pipeline_mode = #tpu.pipeline_mode<synchronous>, transform_indices = @transform_5, window_bounds = array<i64: 512, 512>}, {pipeline_mode = #tpu.pipeline_mode<synchronous>, transform_indices = @transform_6, window_bounds = array<i64: 1, 512>}, {pipeline_mode = #tpu.pipeline_mode<synchronous>, transform_indices = @transform_7, window_bounds = array<i64: 1, 512>}, {transform_indices = @transform_8, window_bounds = array<i64: 1, 1>}, {transform_indices = @transform_9, window_bounds = array<i64: 8, 1>}, {transform_indices = @transform_10, window_bounds = array<i64: 8, 512>}, {transform_indices = @transform_11, window_bounds = array<i64: 8, 512>}, {transform_indices = @transform_12, window_bounds = array<i64: 8, 512>}]} {
    %c0 = arith.constant 0 : index
    %c0_0 = arith.constant 0 : index
    %0 = vector.load %arg1[%c0, %c0_0] : memref<8x700xf32, #tpu.memory_space<vmem>>, vector<8x700xf32>
    %1 = arith.truncf %0 : vector<8x700xf32> to vector<8x700xbf16>
    %c0_1 = arith.constant 0 : index
    %c0_2 = arith.constant 0 : index
    %2 = vector.load %arg2[%c0_1, %c0_2] : memref<700x512xbf16, #tpu.memory_space<vmem>>, vector<700x512xbf16>
    %cst = arith.constant dense<0.000000e+00> : vector<8x512xf32>
    %3 = tpu.matmul %1, %2, %cst {dimension_numbers = #tpu.dot_dimension_numbers<[1], [0], [0], [1], [0, 0, 1, 1], [], []>} : vector<8x700xbf16>, vector<700x512xbf16>, vector<8x512xf32> -> vector<8x512xf32>
    %c0_3 = arith.constant 0 : index
    %c0_4 = arith.constant 0 : index
    %4 = vector.load %arg3[%c0_3, %c0_4] : memref<1x512xf32, #tpu.memory_space<vmem>>, vector<1x512xf32>
    %5 = vector.broadcast %4 : vector<1x512xf32> to vector<8x512xf32>
    %6 = arith.addf %3, %5 : vector<8x512xf32>
    %cst_5 = arith.constant 0.000000e+00 : f32
    %7 = vector.broadcast %cst_5 : f32 to vector<8x512xf32>
    %8 = arith.cmpf oge, %6, %7 : vector<8x512xf32>
    %cst_6 = arith.constant 0.00999999977 : f32
    %9 = vector.broadcast %cst_6 : f32 to vector<8x512xf32>
    %10 = arith.mulf %9, %6 : vector<8x512xf32>
    %11 = arith.select %8, %6, %10 : vector<8x512xi1>, vector<8x512xf32>
    %12 = arith.truncf %11 : vector<8x512xf32> to vector<8x512xbf16>
    %c0_7 = arith.constant 0 : index
    %c0_8 = arith.constant 0 : index
    %13 = vector.load %arg4[%c0_7, %c0_8] : memref<512x512xbf16, #tpu.memory_space<vmem>>, vector<512x512xbf16>
    %cst_9 = arith.constant dense<0.000000e+00> : vector<8x512xf32>
    %14 = tpu.matmul %12, %13, %cst_9 {dimension_numbers = #tpu.dot_dimension_numbers<[1], [0], [0], [1], [0, 0, 1, 1], [], []>} : vector<8x512xbf16>, vector<512x512xbf16>, vector<8x512xf32> -> vector<8x512xf32>
    %c0_10 = arith.constant 0 : index
    %c0_11 = arith.constant 0 : index
    %15 = vector.load %arg5[%c0_10, %c0_11] : memref<1x512xf32, #tpu.memory_space<vmem>>, vector<1x512xf32>
    %16 = vector.broadcast %15 : vector<1x512xf32> to vector<8x512xf32>
    %17 = arith.addf %14, %16 : vector<8x512xf32>
    %cst_12 = arith.constant 0.000000e+00 : f32
    %18 = vector.broadcast %cst_12 : f32 to vector<8x512xf32>
    %19 = arith.cmpf oge, %17, %18 : vector<8x512xf32>
    %cst_13 = arith.constant 0.00999999977 : f32
    %20 = vector.broadcast %cst_13 : f32 to vector<8x512xf32>
    %21 = arith.mulf %20, %17 : vector<8x512xf32>
    %22 = arith.select %19, %17, %21 : vector<8x512xi1>, vector<8x512xf32>
    %23 = arith.truncf %22 : vector<8x512xf32> to vector<8x512xbf16>
    %c0_14 = arith.constant 0 : index
    %c0_15 = arith.constant 0 : index
    %24 = vector.load %arg6[%c0_14, %c0_15] : memref<512x512xbf16, #tpu.memory_space<vmem>>, vector<512x512xbf16>
    %cst_16 = arith.constant dense<0.000000e+00> : vector<8x512xf32>
    %25 = tpu.matmul %23, %24, %cst_16 {dimension_numbers = #tpu.dot_dimension_numbers<[1], [0], [0], [1], [0, 0, 1, 1], [], []>} : vector<8x512xbf16>, vector<512x512xbf16>, vector<8x512xf32> -> vector<8x512xf32>
    %c0_17 = arith.constant 0 : index
    %c0_18 = arith.constant 0 : index
    %26 = vector.load %arg7[%c0_17, %c0_18] : memref<1x512xf32, #tpu.memory_space<vmem>>, vector<1x512xf32>
    %27 = vector.broadcast %26 : vector<1x512xf32> to vector<8x512xf32>
    %28 = arith.addf %25, %27 : vector<8x512xf32>
    %cst_19 = arith.constant 0.000000e+00 : f32
    %29 = vector.broadcast %cst_19 : f32 to vector<8x512xf32>
    %30 = arith.cmpf oge, %28, %29 : vector<8x512xf32>
    %cst_20 = arith.constant 0.00999999977 : f32
    %31 = vector.broadcast %cst_20 : f32 to vector<8x512xf32>
    %32 = arith.mulf %31, %28 : vector<8x512xf32>
    %33 = arith.select %30, %28, %32 : vector<8x512xi1>, vector<8x512xf32>
    %c0_21 = arith.constant 0 : index
    %c0_22 = arith.constant 0 : index
    %34 = vector.load %arg8[%c0_21, %c0_22] : memref<1x512xf32, #tpu.memory_space<vmem>>, vector<1x512xf32>
    %35 = vector.broadcast %34 : vector<1x512xf32> to vector<8x512xf32>
    %36 = arith.mulf %33, %35 : vector<8x512xf32>
    %cst_23 = arith.constant dense<0.000000e+00> : vector<8xf32>
    %37 = vector.multi_reduction <add>, %36, %cst_23 [1] : vector<8x512xf32> to vector<8xf32>
    %38 = vector.shape_cast %37 : vector<8xf32> to vector<8x1xf32>
    %c0_24 = arith.constant 0 : index
    %c0_25 = arith.constant 0 : index
    %39 = memref.load %arg9[%c0_24, %c0_25] : memref<1x1xf32, #tpu.memory_space<smem>>
    %40 = vector.broadcast %39 : f32 to vector<8x1xf32>
    %41 = arith.addf %38, %40 : vector<8x1xf32>
    %c0_26 = arith.constant 0 : index
    %c0_27 = arith.constant 0 : index
    %42 = vector.load %arg10[%c0_26, %c0_27] : memref<8x1xf32, #tpu.memory_space<vmem>>, vector<8x1xf32>
    tpu.vector_store %arg10[%c0_26, %c0_27], %41 {strides = array<i32>} : memref<8x1xf32, #tpu.memory_space<vmem>>, vector<8x1xf32>,
    %43 = arith.truncf %11 : vector<8x512xf32> to vector<8x512xbf16>
    %c0_28 = arith.constant 0 : index
    %c0_29 = arith.constant 0 : index
    %44 = vector.load %arg11[%c0_28, %c0_29] : memref<8x512xbf16, #tpu.memory_space<vmem>>, vector<8x512xbf16>
    tpu.vector_store %arg11[%c0_28, %c0_29], %43 {strides = array<i32>} : memref<8x512xbf16, #tpu.memory_space<vmem>>, vector<8x512xbf16>,
    %45 = arith.truncf %22 : vector<8x512xf32> to vector<8x512xbf16>
    %c0_30 = arith.constant 0 : index
    %c0_31 = arith.constant 0 : index
    %46 = vector.load %arg12[%c0_30, %c0_31] : memref<8x512xbf16, #tpu.memory_space<vmem>>, vector<8x512xbf16>
    tpu.vector_store %arg12[%c0_30, %c0_31], %45 {strides = array<i32>} : memref<8x512xbf16, #tpu.memory_space<vmem>>, vector<8x512xbf16>,
    %47 = arith.truncf %33 : vector<8x512xf32> to vector<8x512xbf16>
    %c0_32 = arith.constant 0 : index
    %c0_33 = arith.constant 0 : index
    %48 = vector.load %arg13[%c0_32, %c0_33] : memref<8x512xbf16, #tpu.memory_space<vmem>>, vector<8x512xbf16>
    tpu.vector_store %arg13[%c0_32, %c0_33], %47 {strides = array<i32>} : memref<8x512xbf16, #tpu.memory_space<vmem>>, vector<8x512xbf16>,
    return
  }
  func.func @transform_0(%arg0: i32) -> (i32, i32) {
    %c0_i32 = arith.constant 0 : i32
    %c0_i32_0 = arith.constant 0 : i32
    return %arg0, %c0_i32 : i32, i32
  }
  func.func @transform_1(%arg0: i32) -> (i32, i32) {
    %c0_i32 = arith.constant 0 : i32
    %c0_i32_0 = arith.constant 0 : i32
    %c0_i32_1 = arith.constant 0 : i32
    return %c0_i32, %c0_i32_0 : i32, i32
  }
  func.func @transform_2(%arg0: i32) -> (i32, i32) {
    %c0_i32 = arith.constant 0 : i32
    %c0_i32_0 = arith.constant 0 : i32
    %c0_i32_1 = arith.constant 0 : i32
    return %c0_i32, %c0_i32_0 : i32, i32
  }
  func.func @transform_3(%arg0: i32) -> (i32, i32) {
    %c0_i32 = arith.constant 0 : i32
    %c0_i32_0 = arith.constant 0 : i32
    %c0_i32_1 = arith.constant 0 : i32
    return %c0_i32, %c0_i32_0 : i32, i32
  }
  func.func @transform_4(%arg0: i32) -> (i32, i32) {
    %c0_i32 = arith.constant 0 : i32
    %c0_i32_0 = arith.constant 0 : i32
    %c0_i32_1 = arith.constant 0 : i32
    return %c0_i32, %c0_i32_0 : i32, i32
  }
  func.func @transform_5(%arg0: i32) -> (i32, i32) {
    %c0_i32 = arith.constant 0 : i32
    %c0_i32_0 = arith.constant 0 : i32
    %c0_i32_1 = arith.constant 0 : i32
    return %c0_i32, %c0_i32_0 : i32, i32
  }
  func.func @transform_6(%arg0: i32) -> (i32, i32) {
    %c0_i32 = arith.constant 0 : i32
    %c0_i32_0 = arith.constant 0 : i32
    %c0_i32_1 = arith.constant 0 : i32
    return %c0_i32, %c0_i32_0 : i32, i32
  }
  func.func @transform_7(%arg0: i32) -> (i32, i32) {
    %c0_i32 = arith.constant 0 : i32
    %c0_i32_0 = arith.constant 0 : i32
    %c0_i32_1 = arith.constant 0 : i32
    return %c0_i32, %c0_i32_0 : i32, i32
  }
  func.func @transform_8(%arg0: i32) -> (i32, i32) {
    %c0_i32 = arith.constant 0 : i32
    %c0_i32_0 = arith.constant 0 : i32
    %c0_i32_1 = arith.constant 0 : i32
    return %c0_i32, %c0_i32_0 : i32, i32
  }
  func.func @transform_9(%arg0: i32) -> (i32, i32) {
    %c0_i32 = arith.constant 0 : i32
    %c0_i32_0 = arith.constant 0 : i32
    return %arg0, %c0_i32 : i32, i32
  }
  func.func @transform_10(%arg0: i32) -> (i32, i32) {
    %c0_i32 = arith.constant 0 : i32
    %c0_i32_0 = arith.constant 0 : i32
    return %arg0, %c0_i32 : i32, i32
  }
  func.func @transform_11(%arg0: i32) -> (i32, i32) {
    %c0_i32 = arith.constant 0 : i32
    %c0_i32_0 = arith.constant 0 : i32
    return %arg0, %c0_i32 : i32, i32
  }
  func.func @transform_12(%arg0: i32) -> (i32, i32) {
    %c0_i32 = arith.constant 0 : i32
    %c0_i32_0 = arith.constant 0 : i32
    return %arg0, %c0_i32 : i32, i32
  }
}

</mosaic_0001>

<bundles_post_ra>
// kernel: tpu_custom_call.1
= control target key start
LH: loop header
LB: loop body
LE: loop exit
PB: predicated region body
PF: predicated region fallthrough
CT: control target
= control target key end

     0   :  { %19 = vsyncpa [#allocation4], 0  ;;  %s5056_s0 = inlined_call_operand.hbm [shape: f32[8,700], index: 0, kind: input, shape index: {}]   ;;  %s5057_s1 = inlined_call_operand.hbm [shape: bf16[700,512], index: 1, kind: input, shape index: {}]   ;;  %s5058_s2 = inlined_call_operand.vmem [shape: f32[1,512], index: 2, kind: input, shape index: {}]   ;;  %s5059_s3 = inlined_call_operand.hbm [shape: bf16[512,512], index: 3, kind: input, shape index: {}]   ;;  %s5060_s4 = inlined_call_operand.vmem [shape: f32[1,512], index: 4, kind: input, shape index: {}]   ;;  %s5061_s5 = inlined_call_operand.hbm [shape: bf16[512,512], index: 5, kind: input, shape index: {}]   ;;  %s5062_s6 = inlined_call_operand.vmem [shape: f32[1,512], index: 6, kind: input, shape index: {}]   ;;  %s5063_s7 = inlined_call_operand.vmem [shape: f32[1,512], index: 7, kind: input, shape index: {}]   ;;  %s5064_s8 = inlined_call_operand.<no memory space> [shape: f32[1,1], index: 8, kind: input, shape index: {}]   ;;  %s5065_s9 = inlined_call_operand.vmem [shape: f32[8,1], index: 9, kind: output, shape index: {0}]   ;;  %s5066_s10 = inlined_call_operand.hbm [shape: bf16[8,512], index: 10, kind: output, shape index: {1}]   ;;  %s5067_s11 = inlined_call_operand.hbm [shape: bf16[8,512], index: 11, kind: output, shape index: {2}]   ;;  %s5068_s12 = inlined_call_operand.hbm [shape: bf16[8,512], index: 12, kind: output, shape index: {3}]  }
   0x1   :  { %20 = vsyncpa [#allocation7], 0 }
   0x2   :  { %21 = vsyncpa [#allocation10], 0 }
   0x3   :  { %22 = vsyncpa [#allocation5], 0 }
   0x4   :  { %23 = vsyncpa [#allocation13], 0  ;;  %s4837_s21 = smov [#allocation6]   ;;  %s4673_s25 = scalar_lea.hbm %s5057_s1, 22528 }
   0x5   :  { %s39_s22 = sshll.u32 %s4837_s21, 4  ;;  %p4674_p0 = scmp.ne.s32.totalorder %s5057_s1, %s4673_s25  ;;  %s40_s22 = int_to_ptr.vmem [resolvable:$true] %s39_s22 }
   0x6   :  { %p4677_p1 = scmp.lt.u32.totalorder %s4673_s25, %s5057_s1 }
   0x8   :  { %p4679_p2 = pnand %p4677_p1, %p4674_p0 }
   0xa   :  { %4682 = shalt.err (!%p4679_p2)
}
   0xb   :  { %s4683_s30 = scalar_lea.vmem %s40_s22, 22528  ;;  %p4688_p4 = scmp.lt.s32.totalorder %s40_s22, %s40_s22 }
   0xc   :  { %p4684_p3 = scmp.ne.s32.totalorder %s40_s22, %s4683_s30  ;;  %p4689_p5 = scmp.lt.s32.totalorder %s4683_s30, %s4683_s30 }
   0xe   :  { %p4690_p6 = por %p4689_p5, %p4688_p4 }
  0x10   :  { %p4691_p7 = pnand %p4690_p6, %p4684_p3 }
  0x12   :  { %4694 = shalt.err (!%p4691_p7)
}
  0x13   :  { %s4838_s13 = smov 256   ;;  %s4839_s14 = smov 16  }
  0x14   :  { %45 = dma.hbm_to_vmem [thread:$0]  %s5057_s1, 22528, %s40_s22, [#allocation7], %s4838_s13, %s4838_s13, %s4839_s14  }
  0x15   :  { %s4840_s17 = smov [#allocation3]   ;;  %s4841_s19 = smov [#allocation8]  }
  0x16   :  { %s30_s18 = sshll.u32 %s4840_s17, 4  ;;  %s53_s20 = sshll.u32 %s4841_s19, 4  ;;  %s31_s18 = int_to_ptr.vmem [resolvable:$true] %s30_s18  ;;  %s54_s20 = int_to_ptr.vmem [resolvable:$true] %s53_s20 }
  0x17   :  { %s4695_s24 = scalar_lea.hbm %s5056_s0, 768 }
  0x18   :  { %p4696_p8 = scmp.ne.s32.totalorder %s5056_s0, %s4695_s24  ;;  %p4699_p9 = scmp.lt.u32.totalorder %s4695_s24, %s5056_s0 }
  0x1a   :  { %p4701_p10 = pnand %p4699_p9, %p4696_p8 }
  0x1c   :  { %4704 = shalt.err (!%p4701_p10)
}
  0x1d   :  { %s4705_s1 = scalar_lea.vmem %s31_s18, 768  ;;  %p4710_p12 = scmp.lt.s32.totalorder %s31_s18, %s31_s18 }
  0x1e   :  { %p4706_p11 = scmp.ne.s32.totalorder %s31_s18, %s4705_s1  ;;  %p4711_p13 = scmp.lt.s32.totalorder %s4705_s1, %s4705_s1 }
  0x20   :  { %p4712_p0 = por %p4711_p13, %p4710_p12 }
  0x22   :  { %p4713_p1 = pnand %p4712_p0, %p4706_p11 }
  0x24   :  { %4716 = shalt.err (!%p4713_p1)
}
  0x25   :  { %33 = dma.hbm_to_vmem [thread:$0]  %s5056_s0, 768, %s31_s18, [#allocation4]  }
  0x26   :  { %s4717_s16 = scalar_lea.hbm %s5059_s3, 16384 }
  0x27   :  { %p4718_p2 = scmp.ne.s32.totalorder %s5059_s3, %s4717_s16  ;;  %p4721_p3 = scmp.lt.u32.totalorder %s4717_s16, %s5059_s3 }
  0x29   :  { %p4723_p4 = pnand %p4721_p3, %p4718_p2 }
  0x2b   :  { %4726 = shalt.err (!%p4723_p4)
}
  0x2c   :  { %s4727_s24 = scalar_lea.vmem %s54_s20, 16384  ;;  %p4732_p6 = scmp.lt.s32.totalorder %s54_s20, %s54_s20 }
  0x2d   :  { %p4728_p5 = scmp.ne.s32.totalorder %s54_s20, %s4727_s24  ;;  %p4733_p7 = scmp.lt.s32.totalorder %s4727_s24, %s4727_s24 }
  0x2f   :  { %p4734_p8 = por %p4733_p7, %p4732_p6 }
  0x31   :  { %p4735_p9 = pnand %p4734_p8, %p4728_p5 }
  0x33   :  { %4738 = shalt.err (!%p4735_p9)
}
  0x34   :  { %59 = dma.hbm_to_vmem [thread:$0]  %s5059_s3, 16384, %s54_s20, [#allocation7], %s4838_s13, %s4838_s13, %s4839_s14  }
  0x35   :  { %s4842_s25 = smov [#allocation9]   ;;  %s4739_s1 = scalar_lea.hbm %s5061_s5, 16384 }
  0x36   :  { %s67_s26 = sshll.u32 %s4842_s25, 4  ;;  %p4740_p10 = scmp.ne.s32.totalorder %s5061_s5, %s4739_s1  ;;  %s68_s26 = int_to_ptr.vmem [resolvable:$true] %s67_s26 }
  0x37   :  { %p4743_p11 = scmp.lt.u32.totalorder %s4739_s1, %s5061_s5 }
  0x39   :  { %p4745_p12 = pnand %p4743_p11, %p4740_p10 }
  0x3b   :  { %4748 = shalt.err (!%p4745_p12)
}
  0x3c   :  { %s4749_s16 = scalar_lea.vmem %s68_s26, 16384  ;;  %p4754_p0 = scmp.lt.s32.totalorder %s68_s26, %s68_s26 }
  0x3d   :  { %p4750_p13 = scmp.ne.s32.totalorder %s68_s26, %s4749_s16  ;;  %p4755_p1 = scmp.lt.s32.totalorder %s4749_s16, %s4749_s16 }
  0x3f   :  { %p4756_p2 = por %p4755_p1, %p4754_p0 }
  0x41   :  { %p4757_p3 = pnand %p4756_p2, %p4750_p13 }
  0x43   :  { %4760 = shalt.err (!%p4757_p3)
}
  0x44   :  { %73 = dma.hbm_to_vmem [thread:$0]  %s5061_s5, 16384, %s68_s26, [#allocation10], %s4838_s13, %s4838_s13, %s4839_s14  }
  0x45   :  { %4827 = dma.done.wait [#allocation4], 768  }
  0x46   :  { %4828 = vsyncadd [#allocation4], 4294966528 }
  0x47   :  { %4829 = dma.done.wait [#allocation7], 38912  }
  0x48   :  { %4830 = vsyncadd [#allocation7], 4294928384 }
  0x49   :  { %4831 = dma.done.wait [#allocation10], 16384  }
  0x4a   :  { %4832 = vsyncadd [#allocation10], 4294950912  ;;  %v4025_v0 = vld [vmem:[#allocation6 + $0x4] ss:$16 sps:$4 sm:$0xff]   ;;  %v4027_v1 = vld [vmem:[#allocation6 + $0xc] ss:$16 sps:$4 sm:$0xff]  }
  0x4b   :  { %1196 = vmatprep.subr.bf16.mxu0 %v4025_v0  ;;  %v4029_v2 = vld [vmem:[#allocation6] ss:$16 sps:$4 sm:$0xff]   ;;  %v4030_v3 = vld [vmem:[#allocation6 + $0x8] ss:$16 sps:$4 sm:$0xff]   ;;  %1319 = vmatprep.subr.bf16.mxu1 %v4027_v1  ;;  %v4031_v4 = vld [vmem:[#allocation6 + $0x24] ss:$16 sps:$4 sm:$0xff]  }
  0x4c   :  { %1197 = vmatpush1.bf16.msra.mxu0 %v4029_v2  ;;  %1320 = vmatpush1.bf16.msra.mxu1 %v4030_v3  ;;  %v4033_v5 = vld [vmem:[#allocation6 + $0x2c] ss:$16 sps:$4 sm:$0xff]   ;;  %v4035_v6 = vld [vmem:[#allocation6 + $0x20] ss:$16 sps:$4 sm:$0xff]   ;;  %v4036_v7 = vld [vmem:[#allocation6 + $0x28] ss:$16 sps:$4 sm:$0xff]  }
  0x4d   :  { %1198 = vmatprep.subr.bf16.mxu0 %v4031_v4  ;;  %1321 = vmatprep.subr.bf16.mxu1 %v4033_v5  ;;  %v4037_v8 = vld [vmem:[#allocation6 + $0x44] ss:$16 sps:$4 sm:$0xff]   ;;  %v4039_v9 = vld [vmem:[#allocation6 + $0x4c] ss:$16 sps:$4 sm:$0xff]   ;;  %v4041_v10 = vld [vmem:[#allocation6 + $0x40] ss:$16 sps:$4 sm:$0xff]  }
  0x4e   :  { %v4042_v11 = vld [vmem:[#allocation6 + $0x48] ss:$16 sps:$4 sm:$0xff]   ;;  %v4043_v12 = vld [vmem:[#allocation6 + $0x64] ss:$16 sps:$4 sm:$0xff]   ;;  %v4045_v13 = vld [vmem:[#allocation6 + $0x6c] ss:$16 sps:$4 sm:$0xff]  }
  0x4f   :  { %v4047_v14 = vld [vmem:[#allocation6 + $0x60] ss:$16 sps:$4 sm:$0xff]   ;;  %v4048_v15 = vld [vmem:[#allocation6 + $0x68] ss:$16 sps:$4 sm:$0xff]   ;;  %v4049_v16 = vld [vmem:[#allocation6 + $0x84] ss:$16 sps:$4 sm:$0xff]  }
  0x50   :  { %1199 = vmatpush1.bf16.msra.mxu0 %v4035_v6  ;;  %1322 = vmatpush1.bf16.msra.mxu1 %v4036_v7  ;;  %v4051_v17 = vld [vmem:[#allocation6 + $0x8c] ss:$16 sps:$4 sm:$0xff]   ;;  %v4053_v18 = vld [vmem:[#allocation6 + $0x80] ss:$16 sps:$4 sm:$0xff]   ;;  %v4054_v19 = vld [vmem:[#allocation6 + $0x88] ss:$16 sps:$4 sm:$0xff]  }
  0x51   :  { %1200 = vmatprep.subr.bf16.mxu0 %v4037_v8  ;;  %1323 = vmatprep.subr.bf16.mxu1 %v4039_v9  ;;  %v4055_v20 = vld [vmem:[#allocation6 + $0xa4] ss:$16 sps:$4 sm:$0xff]   ;;  %v4057_v21 = vld [vmem:[#allocation6 + $0xac] ss:$16 sps:$4 sm:$0xff]   ;;  %v4059_v22 = vld [vmem:[#allocation6 + $0xa0] ss:$16 sps:$4 sm:$0xff]  }
  0x52   :  { %v4060_v23 = vld [vmem:[#allocation6 + $0xa8] ss:$16 sps:$4 sm:$0xff]   ;;  %v4061_v24 = vld [vmem:[#allocation6 + $0xc4] ss:$16 sps:$4 sm:$0xff]   ;;  %v4063_v25 = vld [vmem:[#allocation6 + $0xcc] ss:$16 sps:$4 sm:$0xff]  }
  0x53   :  { %v4065_v26 = vld [vmem:[#allocation6 + $0xc0] ss:$16 sps:$4 sm:$0xff]   ;;  %v4066_v27 = vld [vmem:[#allocation6 + $0xc8] ss:$16 sps:$4 sm:$0xff]   ;;  %v4067_v28 = vld [vmem:[#allocation6 + $0xe4] ss:$16 sps:$4 sm:$0xff]  }
  0x54   :  { %1201 = vmatpush1.bf16.msra.mxu0 %v4041_v10  ;;  %1324 = vmatpush1.bf16.msra.mxu1 %v4042_v11  ;;  %v4069_v29 = vld [vmem:[#allocation6 + $0xec] ss:$16 sps:$4 sm:$0xff]   ;;  %v4071_v30 = vld [vmem:[#allocation6 + $0xe0] ss:$16 sps:$4 sm:$0xff]   ;;  %v4072_v31 = vld [vmem:[#allocation6 + $0xe8] ss:$16 sps:$4 sm:$0xff]  }
  0x55   :  { %1202 = vmatprep.subr.bf16.mxu0 %v4043_v12  ;;  %1325 = vmatprep.subr.bf16.mxu1 %v4045_v13  ;;  %v4073_v32 = vld [vmem:[#allocation6 + $0x104] ss:$16 sps:$4 sm:$0xff]   ;;  %v4075_v33 = vld [vmem:[#allocation6 + $0x10c] ss:$16 sps:$4 sm:$0xff]   ;;  %v4077_v34 = vld [vmem:[#allocation6 + $0x100] ss:$16 sps:$4 sm:$0xff]  }
  0x56   :  { %v4078_v35 = vld [vmem:[#allocation6 + $0x108] ss:$16 sps:$4 sm:$0xff]   ;;  %v4079_v36 = vld [vmem:[#allocation6 + $0x124] ss:$16 sps:$4 sm:$0xff]   ;;  %v4081_v37 = vld [vmem:[#allocation6 + $0x12c] ss:$16 sps:$4 sm:$0xff]  }
  0x57   :  { %v4083_v38 = vld [vmem:[#allocation6 + $0x120] ss:$16 sps:$4 sm:$0xff]   ;;  %v4084_v39 = vld [vmem:[#allocation6 + $0x128] ss:$16 sps:$4 sm:$0xff]   ;;  %v4085_v40 = vld [vmem:[#allocation6 + $0x144] ss:$16 sps:$4 sm:$0xff]  }
  0x58   :  { %1203 = vmatpush1.bf16.msra.mxu0 %v4047_v14  ;;  %1326 = vmatpush1.bf16.msra.mxu1 %v4048_v15  ;;  %v4087_v41 = vld [vmem:[#allocation6 + $0x14c] ss:$16 sps:$4 sm:$0xff]   ;;  %v4089_v42 = vld [vmem:[#allocation6 + $0x140] ss:$16 sps:$4 sm:$0xff]   ;;  %v4090_v43 = vld [vmem:[#allocation6 + $0x148] ss:$16 sps:$4 sm:$0xff]  }
  0x59   :  { %1204 = vmatprep.subr.bf16.mxu0 %v4049_v16  ;;  %1327 = vmatprep.subr.bf16.mxu1 %v4051_v17  ;;  %v4091_v44 = vld [vmem:[#allocation6 + $0x164] ss:$16 sps:$4 sm:$0xff]   ;;  %v4093_v45 = vld [vmem:[#allocation6 + $0x16c] ss:$16 sps:$4 sm:$0xff]   ;;  %v4095_v47 = vld [vmem:[#allocation6 + $0x160] ss:$16 sps:$4 sm:$0xff]  }
  0x5a   :  { %v94_v46 = vld [vmem:[#allocation3 + $0x8] sm:$0xff]  ;;  %v4097_v50 = vld [vmem:[#allocation6 + $0x184] ss:$16 sps:$4 sm:$0xff]   ;;  %v4101_v52 = vld [vmem:[#allocation6 + $0x180] ss:$16 sps:$4 sm:$0xff]   ;;  %vm1179_vm0 = vcmask 490496  }
  0x5b   :  { %v100_v48 = vpack.c.bf16 %v94_v46, %v94_v46  ;;  %v4096_v49 = vld [vmem:[#allocation6 + $0x168] ss:$16 sps:$4 sm:$0xff]   ;;  %v4099_v51 = vld [vmem:[#allocation6 + $0x18c] ss:$16 sps:$4 sm:$0xff]   ;;  %v4103_v54 = vld [vmem:[#allocation6 + $0x1a4] ss:$16 sps:$4 sm:$0xff]  }
  0x5c   :  { %1205 = vmatpush1.bf16.msra.mxu0 %v4053_v18  ;;  %1328 = vmatpush1.bf16.msra.mxu1 %v4054_v19  ;;  %v4102_v53 = vld [vmem:[#allocation6 + $0x188] ss:$16 sps:$4 sm:$0xff]   ;;  %v4105_v55 = vld [vmem:[#allocation6 + $0x1ac] ss:$16 sps:$4 sm:$0xff]   ;;  %v4107_v56 = vld [vmem:[#allocation6 + $0x1a0] ss:$16 sps:$4 sm:$0xff]  }
  0x5d   :  { %1206 = vmatprep.subr.bf16.mxu0 %v4055_v20  ;;  %1329 = vmatprep.subr.bf16.mxu1 %v4057_v21  ;;  %v4108_v57 = vld [vmem:[#allocation6 + $0x1a8] ss:$16 sps:$4 sm:$0xff]   ;;  %v4109_v58 = vld [vmem:[#allocation6 + $0x1c4] ss:$16 sps:$4 sm:$0xff]   ;;  %v4111_v59 = vld [vmem:[#allocation6 + $0x1cc] ss:$16 sps:$4 sm:$0xff]  }
  0x5e   :  { %1228 = vmatprep.mubr.bf16.mxu0 %v100_v48  ;;  %1351 = vmatprep.mubr.bf16.mxu1 %v100_v48  ;;  %v4113_v60 = vld [vmem:[#allocation6 + $0x1c0] ss:$16 sps:$4 sm:$0xff]   ;;  %v4114_v61 = vld [vmem:[#allocation6 + $0x1c8] ss:$16 sps:$4 sm:$0xff]   ;;  %v4115_v62 = vld [vmem:[#allocation6 + $0x1e4] ss:$16 sps:$4 sm:$0xff]  }
  0x5f   :  { %v4117_v63 = vld [vmem:[#allocation6 + $0x1ec] ss:$16 sps:$4 sm:$0xff]   ;;  %v4119_v0 = vld [vmem:[#allocation6 + $0x1e0] ss:$16 sps:$4 sm:$0xff]   ;;  %v4120_v1 = vld [vmem:[#allocation6 + $0x1e8] ss:$16 sps:$4 sm:$0xff]  }
  0x60   :  { %1207 = vmatpush1.bf16.msra.mxu0 %v4059_v22  ;;  %1330 = vmatpush1.bf16.msra.mxu1 %v4060_v23  ;;  %v93_v2 = vld [vmem:[#allocation3] sm:$0xff]  ;;  %v4126_v4 = vld [vmem:[#allocation6 + $0x20c] ss:$16 sps:$4 sm:$0xff]   ;;  %v4124_v7 = vld [vmem:[#allocation6 + $0x208] ss:$16 sps:$4 sm:$0xff]   ;;  %vm1183_vm1 = vcmask 1045504  }
  0x61   :  { %1208 = vmatprep.subr.bf16.mxu0 %v4061_v24  ;;  %1331 = vmatprep.subr.bf16.mxu1 %v4063_v25  ;;  %v4123_v3 = vld [vmem:[#allocation6 + $0x204] ss:$16 sps:$4 sm:$0xff]   ;;  %v99_v5 = vpack.c.bf16 %v93_v2, %v93_v2  ;;  %v4121_v6 = vld [vmem:[#allocation6 + $0x200] ss:$16 sps:$4 sm:$0xff]   ;;  %v4132_v9 = vld [vmem:[#allocation6 + $0x22c] ss:$16 sps:$4 sm:$0xff]  }
  0x62   :  { %v4129_v8 = vld [vmem:[#allocation6 + $0x224] ss:$16 sps:$4 sm:$0xff]   ;;  %v4127_v10 = vld [vmem:[#allocation6 + $0x220] ss:$16 sps:$4 sm:$0xff]   ;;  %v4130_v11 = vld [vmem:[#allocation6 + $0x228] ss:$16 sps:$4 sm:$0xff]  }
  0x63   :  { %v4135_v12 = vld [vmem:[#allocation6 + $0x244] ss:$16 sps:$4 sm:$0xff]   ;;  %v4138_v13 = vld [vmem:[#allocation6 + $0x24c] ss:$16 sps:$4 sm:$0xff]   ;;  %v4133_v14 = vld [vmem:[#allocation6 + $0x240] ss:$16 sps:$4 sm:$0xff]  }
  0x64   :  { %1209 = vmatpush1.bf16.msra.mxu0 %v4065_v26  ;;  %1332 = vmatpush1.bf16.msra.mxu1 %v4066_v27  ;;  %v4136_v15 = vld [vmem:[#allocation6 + $0x248] ss:$16 sps:$4 sm:$0xff]   ;;  %v4141_v16 = vld [vmem:[#allocation6 + $0x264] ss:$16 sps:$4 sm:$0xff]   ;;  %v4144_v17 = vld [vmem:[#allocation6 + $0x26c] ss:$16 sps:$4 sm:$0xff]  }
  0x65   :  { %1210 = vmatprep.subr.bf16.mxu0 %v4067_v28  ;;  %1333 = vmatprep.subr.bf16.mxu1 %v4069_v29  ;;  %v4139_v18 = vld [vmem:[#allocation6 + $0x260] ss:$16 sps:$4 sm:$0xff]   ;;  %v4142_v19 = vld [vmem:[#allocation6 + $0x268] ss:$16 sps:$4 sm:$0xff]   ;;  %v4147_v20 = vld [vmem:[#allocation6 + $0x284] ss:$16 sps:$4 sm:$0xff]  }
  0x66   :  { %v4150_v21 = vld [vmem:[#allocation6 + $0x28c] ss:$16 sps:$4 sm:$0xff]   ;;  %v4145_v22 = vld [vmem:[#allocation6 + $0x280] ss:$16 sps:$4 sm:$0xff]   ;;  %v4148_v23 = vld [vmem:[#allocation6 + $0x288] ss:$16 sps:$4 sm:$0xff]  }
  0x67   :  { %v4153_v24 = vld [vmem:[#allocation6 + $0x2a4] ss:$16 sps:$4 sm:$0xff]   ;;  %v4156_v25 = vld [vmem:[#allocation6 + $0x2ac] ss:$16 sps:$4 sm:$0xff]   ;;  %v4151_v26 = vld [vmem:[#allocation6 + $0x2a0] ss:$16 sps:$4 sm:$0xff]  }
  0x68   :  { %1211 = vmatpush1.bf16.msra.mxu0 %v4071_v30  ;;  %1334 = vmatpush1.bf16.msra.mxu1 %v4072_v31  ;;  %v4154_v27 = vld [vmem:[#allocation6 + $0x2a8] ss:$16 sps:$4 sm:$0xff]   ;;  %v4159_v28 = vld [vmem:[#allocation6 + $0x2c4] ss:$16 sps:$4 sm:$0xff]   ;;  %v4162_v29 = vld [vmem:[#allocation6 + $0x2cc] ss:$16 sps:$4 sm:$0xff]  }
  0x69   :  { %1212 = vmatprep.subr.bf16.mxu0 %v4073_v32  ;;  %1335 = vmatprep.subr.bf16.mxu1 %v4075_v33  ;;  %v96_v30 = vld [vmem:[#allocation3 + $0x18] sm:$0xff]  ;;  %v4157_v31 = vld [vmem:[#allocation6 + $0x2c0] ss:$16 sps:$4 sm:$0xff]   ;;  %v4183_v46 = vld [vmem:[#allocation6 + $0x344] ss:$16 sps:$4 sm:$0xff]   ;;  %s4844_s23 = smov [#allocation11]  }
  0x6a   :  { %v102_v32 = vpack.c.bf16 %v96_v30, %v96_v30  ;;  %v4160_v33 = vld [vmem:[#allocation6 + $0x2c8] ss:$16 sps:$4 sm:$0xff]   ;;  %v4181_v48 = vld [vmem:[#allocation6 + $0x340] ss:$16 sps:$4 sm:$0xff]   ;;  %v4213_v2 = vld [vmem:[#allocation6 + $0x3e4] ss:$16 sps:$4 sm:$0xff]  }
  0x6b   :  { %v4249_v30 = vld [vmem:[#allocation6 + $0x4a4] ss:$16 sps:$4 sm:$0xff]   ;;  %s3484_s24 = sshll.u32 %s4844_s23, 4  ;;  %s3485_s24 = int_to_ptr.vmem [resolvable:$true] %s3484_s24 }
  0x6c   :  { %1213 = vmatpush1.bf16.msra.mxu0 %v4077_v34  ;;  %1336 = vmatpush1.bf16.msra.mxu1 %v4078_v35  ;;  %v4165_v34 = vld [vmem:[#allocation6 + $0x2e4] ss:$16 sps:$4 sm:$0xff]   ;;  %v4168_v35 = vld [vmem:[#allocation6 + $0x2ec] ss:$16 sps:$4 sm:$0xff]  }
  0x6d   :  { %1214 = vmatprep.subr.bf16.mxu0 %v4079_v36  ;;  %1337 = vmatprep.subr.bf16.mxu1 %v4081_v37  ;;  %v4163_v36 = vld [vmem:[#allocation6 + $0x2e0] ss:$16 sps:$4 sm:$0xff]   ;;  %v4166_v37 = vld [vmem:[#allocation6 + $0x2e8] ss:$16 sps:$4 sm:$0xff]  }
  0x70   :  { %1215 = vmatpush1.bf16.msra.mxu0 %v4083_v38  ;;  %1338 = vmatpush1.bf16.msra.mxu1 %v4084_v39  ;;  %v4171_v38 = vld [vmem:[#allocation6 + $0x304] ss:$16 sps:$4 sm:$0xff]   ;;  %v4174_v39 = vld [vmem:[#allocation6 + $0x30c] ss:$16 sps:$4 sm:$0xff]  }
  0x71   :  { %1216 = vmatprep.subr.bf16.mxu0 %v4085_v40  ;;  %1339 = vmatprep.subr.bf16.mxu1 %v4087_v41  ;;  %v4169_v40 = vld [vmem:[#allocation6 + $0x300] ss:$16 sps:$4 sm:$0xff]   ;;  %v4172_v41 = vld [vmem:[#allocation6 + $0x308] ss:$16 sps:$4 sm:$0xff]  }
  0x74   :  { %1217 = vmatpush1.bf16.msra.mxu0 %v4089_v42  ;;  %1340 = vmatpush1.bf16.msra.mxu1 %v4090_v43  ;;  %v4177_v42 = vld [vmem:[#allocation6 + $0x324] ss:$16 sps:$4 sm:$0xff]   ;;  %v4180_v43 = vld [vmem:[#allocation6 + $0x32c] ss:$16 sps:$4 sm:$0xff]  }
  0x75   :  { %1218 = vmatprep.subr.bf16.mxu0 %v4091_v44  ;;  %1341 = vmatprep.subr.bf16.mxu1 %v4093_v45  ;;  %v4175_v44 = vld [vmem:[#allocation6 + $0x320] ss:$16 sps:$4 sm:$0xff]   ;;  %v4178_v45 = vld [vmem:[#allocation6 + $0x328] ss:$16 sps:$4 sm:$0xff]  }
  0x78   :  { %1219 = vmatpush1.bf16.msra.mxu0 %v4095_v47  ;;  %1342 = vmatpush1.bf16.msra.mxu1 %v4096_v49  ;;  %v4186_v47 = vld [vmem:[#allocation6 + $0x34c] ss:$16 sps:$4 sm:$0xff]   ;;  %v4184_v49 = vld [vmem:[#allocation6 + $0x348] ss:$16 sps:$4 sm:$0xff]  }
  0x79   :  { %1220 = vmatprep.subr.bf16.mxu0 %v4097_v50  ;;  %1343 = vmatprep.subr.bf16.mxu1 %v4099_v51  ;;  %v4189_v50 = vld [vmem:[#allocation6 + $0x364] ss:$16 sps:$4 sm:$0xff]   ;;  %v4192_v51 = vld [vmem:[#allocation6 + $0x36c] ss:$16 sps:$4 sm:$0xff]  }
  0x7c   :  { %1221 = vmatpush1.bf16.msra.mxu0 %v4101_v52  ;;  %1344 = vmatpush1.bf16.msra.mxu1 %v4102_v53  ;;  %v4187_v52 = vld [vmem:[#allocation6 + $0x360] ss:$16 sps:$4 sm:$0xff]   ;;  %v4190_v53 = vld [vmem:[#allocation6 + $0x368] ss:$16 sps:$4 sm:$0xff]  }
  0x7d   :  { %1222 = vmatprep.subr.bf16.mxu0 %v4103_v54  ;;  %1345 = vmatprep.subr.bf16.mxu1 %v4105_v55  ;;  %v4195_v54 = vld [vmem:[#allocation6 + $0x384] ss:$16 sps:$4 sm:$0xff]   ;;  %v4198_v55 = vld [vmem:[#allocation6 + $0x38c] ss:$16 sps:$4 sm:$0xff]  }
  0x80   :  { %1223 = vmatpush1.bf16.msra.mxu0 %v4107_v56  ;;  %1346 = vmatpush1.bf16.msra.mxu1 %v4108_v57  ;;  %v4193_v56 = vld [vmem:[#allocation6 + $0x380] ss:$16 sps:$4 sm:$0xff]   ;;  %v4196_v57 = vld [vmem:[#allocation6 + $0x388] ss:$16 sps:$4 sm:$0xff]  }
  0x81   :  { %1224 = vmatprep.subr.bf16.mxu0 %v4109_v58  ;;  %1347 = vmatprep.subr.bf16.mxu1 %v4111_v59  ;;  %v4201_v58 = vld [vmem:[#allocation6 + $0x3a4] ss:$16 sps:$4 sm:$0xff]   ;;  %v4204_v59 = vld [vmem:[#allocation6 + $0x3ac] ss:$16 sps:$4 sm:$0xff]  }
  0x84   :  { %1225 = vmatpush1.bf16.msra.mxu0 %v4113_v60  ;;  %1348 = vmatpush1.bf16.msra.mxu1 %v4114_v61  ;;  %v4199_v60 = vld [vmem:[#allocation6 + $0x3a0] ss:$16 sps:$4 sm:$0xff]   ;;  %v4202_v61 = vld [vmem:[#allocation6 + $0x3a8] ss:$16 sps:$4 sm:$0xff]  }
  0x85   :  { %1226 = vmatprep.subr.bf16.mxu0 %v4115_v62  ;;  %1349 = vmatprep.subr.bf16.mxu1 %v4117_v63  ;;  %v4207_v62 = vld [vmem:[#allocation6 + $0x3c4] ss:$16 sps:$4 sm:$0xff]   ;;  %v4210_v63 = vld [vmem:[#allocation6 + $0x3cc] ss:$16 sps:$4 sm:$0xff]  }
  0x88   :  { %1227 = vmatpush1.bf16.msra.mxu0 %v4119_v0  ;;  %1350 = vmatpush1.bf16.msra.mxu1 %v4120_v1  ;;  %v4205_v0 = vld [vmem:[#allocation6 + $0x3c0] ss:$16 sps:$4 sm:$0xff]   ;;  %v4208_v1 = vld [vmem:[#allocation6 + $0x3c8] ss:$16 sps:$4 sm:$0xff]  }
  0x89   :  { %1237 = vmatprep.subr.bf16.mxu0 %v4123_v3  ;;  %1360 = vmatprep.subr.bf16.mxu1 %v4126_v4  ;;  %v4216_v3 = vld [vmem:[#allocation6 + $0x3ec] ss:$16 sps:$4 sm:$0xff]   ;;  %v4211_v4 = vld [vmem:[#allocation6 + $0x3e0] ss:$16 sps:$4 sm:$0xff]  }
  0x8b   :  { %1229 = vmatmul.mubr.bf16.vlgmr.msra.gmra.mrb[0].mxu0 %v99_v5  ;;  %1352 = vmatmul.mubr.bf16.vlgmr.msra.gmra.mrb[0].mxu1 %v99_v5  ;;  %v4214_v5 = vld [vmem:[#allocation6 + $0x3e8] ss:$16 sps:$4 sm:$0xff]  }
  0x8c   :  { %1238 = vmatpush1.bf16.msra.mxu0 %v4121_v6  ;;  %1361 = vmatpush1.bf16.msra.mxu1 %v4124_v7  ;;  %v4219_v6 = vld [vmem:[#allocation6 + $0x404] ss:$16 sps:$4 sm:$0xff]  }
  0x8d   :  { %1239 = vmatprep.subr.bf16.mxu0 %v4129_v8  ;;  %1362 = vmatprep.subr.bf16.mxu1 %v4132_v9  ;;  %v95_v7 = vld [vmem:[#allocation3 + $0x10] sm:$0xff]  ;;  %v4222_v8 = vld [vmem:[#allocation6 + $0x40c] ss:$16 sps:$4 sm:$0xff]  }
  0x8e   :  { %1269 = vmatprep.mubr.bf16.mxu0 %v102_v32  ;;  %1392 = vmatprep.mubr.bf16.mxu1 %v102_v32  ;;  %v4217_v9 = vld [vmem:[#allocation6 + $0x400] ss:$16 sps:$4 sm:$0xff]  }
  0x8f   :  { %v4247_v32 = vld [vmem:[#allocation6 + $0x4a0] ss:$16 sps:$4 sm:$0xff]  }
  0x90   :  { %1240 = vmatpush1.bf16.msra.mxu0 %v4127_v10  ;;  %1363 = vmatpush1.bf16.msra.mxu1 %v4130_v11  ;;  %v101_v10 = vpack.c.bf16 %v95_v7, %v95_v7  ;;  %v98_v11 = vld [vmem:[#allocation3 + $0x28] sm:$0xff] }
  0x91   :  { %1241 = vmatprep.subr.bf16.mxu0 %v4135_v12  ;;  %1364 = vmatprep.subr.bf16.mxu1 %v4138_v13  ;;  %v4220_v12 = vld [vmem:[#allocation6 + $0x408] ss:$16 sps:$4 sm:$0xff]   ;;  %v4225_v13 = vld [vmem:[#allocation6 + $0x424] ss:$16 sps:$4 sm:$0xff]   ;;  %v4306_v7 = vld [vmem:[#allocation8 + $0x4c] ss:$16 sps:$4 sm:$0xff]  }
  0x94   :  { %1242 = vmatpush1.bf16.msra.mxu0 %v4133_v14  ;;  %1365 = vmatpush1.bf16.msra.mxu1 %v4136_v15  ;;  %v4228_v14 = vld [vmem:[#allocation6 + $0x42c] ss:$16 sps:$4 sm:$0xff]   ;;  %v104_v15 = vpack.c.bf16 %v98_v11, %v98_v11 }
  0x95   :  { %1243 = vmatprep.subr.bf16.mxu0 %v4141_v16  ;;  %1366 = vmatprep.subr.bf16.mxu1 %v4144_v17  ;;  %v4223_v16 = vld [vmem:[#allocation6 + $0x420] ss:$16 sps:$4 sm:$0xff]   ;;  %v4226_v17 = vld [vmem:[#allocation6 + $0x428] ss:$16 sps:$4 sm:$0xff]   ;;  %v4312_v11 = vld [vmem:[#allocation8 + $0x6c] ss:$16 sps:$4 sm:$0xff]  }
  0x98   :  { %1244 = vmatpush1.bf16.msra.mxu0 %v4139_v18  ;;  %1367 = vmatpush1.bf16.msra.mxu1 %v4142_v19  ;;  %v4231_v18 = vld [vmem:[#allocation6 + $0x444] ss:$16 sps:$4 sm:$0xff]   ;;  %v4234_v19 = vld [vmem:[#allocation6 + $0x44c] ss:$16 sps:$4 sm:$0xff]  }
  0x99   :  { %1245 = vmatprep.subr.bf16.mxu0 %v4147_v20  ;;  %1368 = vmatprep.subr.bf16.mxu1 %v4150_v21  ;;  %v4229_v20 = vld [vmem:[#allocation6 + $0x440] ss:$16 sps:$4 sm:$0xff]   ;;  %v4232_v21 = vld [vmem:[#allocation6 + $0x448] ss:$16 sps:$4 sm:$0xff]  }
  0x9c   :  { %1246 = vmatpush1.bf16.msra.mxu0 %v4145_v22  ;;  %1369 = vmatpush1.bf16.msra.mxu1 %v4148_v23  ;;  %v4237_v22 = vld [vmem:[#allocation6 + $0x464] ss:$16 sps:$4 sm:$0xff]   ;;  %v4240_v23 = vld [vmem:[#allocation6 + $0x46c] ss:$16 sps:$4 sm:$0xff]  }
  0x9d   :  { %1247 = vmatprep.subr.bf16.mxu0 %v4153_v24  ;;  %1370 = vmatprep.subr.bf16.mxu1 %v4156_v25  ;;  %v4235_v24 = vld [vmem:[#allocation6 + $0x460] ss:$16 sps:$4 sm:$0xff]   ;;  %v4238_v25 = vld [vmem:[#allocation6 + $0x468] ss:$16 sps:$4 sm:$0xff]  }
  0xa0   :  { %1248 = vmatpush1.bf16.msra.mxu0 %v4151_v26  ;;  %1371 = vmatpush1.bf16.msra.mxu1 %v4154_v27  ;;  %v4243_v26 = vld [vmem:[#allocation6 + $0x484] ss:$16 sps:$4 sm:$0xff]   ;;  %v4246_v27 = vld [vmem:[#allocation6 + $0x48c] ss:$16 sps:$4 sm:$0xff]  }
  0xa1   :  { %1249 = vmatprep.subr.bf16.mxu0 %v4159_v28  ;;  %1372 = vmatprep.subr.bf16.mxu1 %v4162_v29  ;;  %v4241_v28 = vld [vmem:[#allocation6 + $0x480] ss:$16 sps:$4 sm:$0xff]   ;;  %v4244_v29 = vld [vmem:[#allocation6 + $0x488] ss:$16 sps:$4 sm:$0xff]  }
  0xa4   :  { %1250 = vmatpush1.bf16.msra.mxu0 %v4157_v31  ;;  %1373 = vmatpush1.bf16.msra.mxu1 %v4160_v33  ;;  %v4252_v31 = vld [vmem:[#allocation6 + $0x4ac] ss:$16 sps:$4 sm:$0xff]   ;;  %v4250_v33 = vld [vmem:[#allocation6 + $0x4a8] ss:$16 sps:$4 sm:$0xff]  }
  0xa5   :  { %1251 = vmatprep.subr.bf16.mxu0 %v4165_v34  ;;  %1374 = vmatprep.subr.bf16.mxu1 %v4168_v35  ;;  %v4255_v34 = vld [vmem:[#allocation6 + $0x4c4] ss:$16 sps:$4 sm:$0xff]   ;;  %v4258_v35 = vld [vmem:[#allocation6 + $0x4cc] ss:$16 sps:$4 sm:$0xff]  }
  0xa8   :  { %1252 = vmatpush1.bf16.msra.mxu0 %v4163_v36  ;;  %1375 = vmatpush1.bf16.msra.mxu1 %v4166_v37  ;;  %v4253_v36 = vld [vmem:[#allocation6 + $0x4c0] ss:$16 sps:$4 sm:$0xff]   ;;  %v4256_v37 = vld [vmem:[#allocation6 + $0x4c8] ss:$16 sps:$4 sm:$0xff]  }
  0xa9   :  { %1253 = vmatprep.subr.bf16.mxu0 %v4171_v38  ;;  %1376 = vmatprep.subr.bf16.mxu1 %v4174_v39  ;;  %v4261_v38 = vld [vmem:[#allocation6 + $0x4e4] ss:$16 sps:$4 sm:$0xff]   ;;  %v4264_v39 = vld [vmem:[#allocation6 + $0x4ec] ss:$16 sps:$4 sm:$0xff]  }
  0xac   :  { %1254 = vmatpush1.bf16.msra.mxu0 %v4169_v40  ;;  %1377 = vmatpush1.bf16.msra.mxu1 %v4172_v41  ;;  %v4259_v40 = vld [vmem:[#allocation6 + $0x4e0] ss:$16 sps:$4 sm:$0xff]   ;;  %v4262_v41 = vld [vmem:[#allocation6 + $0x4e8] ss:$16 sps:$4 sm:$0xff]  }
  0xad   :  { %1255 = vmatprep.subr.bf16.mxu0 %v4177_v42  ;;  %1378 = vmatprep.subr.bf16.mxu1 %v4180_v43  ;;  %v4267_v42 = vld [vmem:[#allocation6 + $0x504] ss:$16 sps:$4 sm:$0xff]   ;;  %v4270_v43 = vld [vmem:[#allocation6 + $0x50c] ss:$16 sps:$4 sm:$0xff]  }
  0xb0   :  { %1256 = vmatpush1.bf16.msra.mxu0 %v4175_v44  ;;  %1379 = vmatpush1.bf16.msra.mxu1 %v4178_v45  ;;  %v4265_v44 = vld [vmem:[#allocation6 + $0x500] ss:$16 sps:$4 sm:$0xff]   ;;  %v4268_v45 = vld [vmem:[#allocation6 + $0x508] ss:$16 sps:$4 sm:$0xff]  }
  0xb1   :  { %1257 = vmatprep.subr.bf16.mxu0 %v4183_v46  ;;  %1380 = vmatprep.subr.bf16.mxu1 %v4186_v47  ;;  %v4273_v46 = vld [vmem:[#allocation6 + $0x524] ss:$16 sps:$4 sm:$0xff]   ;;  %v4276_v47 = vld [vmem:[#allocation6 + $0x52c] ss:$16 sps:$4 sm:$0xff]  }
  0xb4   :  { %1258 = vmatpush1.bf16.msra.mxu0 %v4181_v48  ;;  %1381 = vmatpush1.bf16.msra.mxu1 %v4184_v49  ;;  %v4271_v48 = vld [vmem:[#allocation6 + $0x520] ss:$16 sps:$4 sm:$0xff]   ;;  %v4274_v49 = vld [vmem:[#allocation6 + $0x528] ss:$16 sps:$4 sm:$0xff]  }
  0xb5   :  { %1259 = vmatprep.subr.bf16.mxu0 %v4189_v50  ;;  %1382 = vmatprep.subr.bf16.mxu1 %v4192_v51  ;;  %v4279_v50 = vld [vmem:[#allocation6 + $0x544] ss:$16 sps:$4 sm:$0xff]   ;;  %v4282_v51 = vld [vmem:[#allocation6 + $0x54c] ss:$16 sps:$4 sm:$0xff]  }
  0xb8   :  { %1260 = vmatpush1.bf16.msra.mxu0 %v4187_v52  ;;  %1383 = vmatpush1.bf16.msra.mxu1 %v4190_v53  ;;  %v4277_v52 = vld [vmem:[#allocation6 + $0x540] ss:$16 sps:$4 sm:$0xff]   ;;  %v4280_v53 = vld [vmem:[#allocation6 + $0x548] ss:$16 sps:$4 sm:$0xff]  }
  0xb9   :  { %1261 = vmatprep.subr.bf16.mxu0 %v4195_v54  ;;  %1384 = vmatprep.subr.bf16.mxu1 %v4198_v55  ;;  %v4283_v54 = vld [vmem:[#allocation6 + $0x564] ss:$16 sps:$4 sm:$0x3f]   ;;  %v4285_v55 = vld [vmem:[#allocation6 + $0x56c] ss:$16 sps:$4 sm:$0x3f]  }
  0xbc   :  { %1262 = vmatpush1.bf16.msra.mxu0 %v4193_v56  ;;  %1385 = vmatpush1.bf16.msra.mxu1 %v4196_v57  ;;  %v4287_v56 = vld [vmem:[#allocation6 + $0x560] ss:$16 sps:$4 sm:$0x3f]   ;;  %v4288_v57 = vld [vmem:[#allocation6 + $0x568] ss:$16 sps:$4 sm:$0x3f]  }
  0xbd   :  { %1263 = vmatprep.subr.bf16.mxu0 %v4201_v58  ;;  %1386 = vmatprep.subr.bf16.mxu1 %v4204_v59  ;;  %v97_v58 = vld [vmem:[#allocation3 + $0x20] sm:$0xff] }
  0xbe   :  { %v4291_v59 = vld [vmem:[#allocation8 + $0x4] ss:$16 sps:$4 sm:$0xff]  }
  0xc0   :  { %1264 = vmatpush1.bf16.msra.mxu0 %v4199_v60  ;;  %1387 = vmatpush1.bf16.msra.mxu1 %v4202_v61  ;;  %v4294_v60 = vld [vmem:[#allocation8 + $0xc] ss:$16 sps:$4 sm:$0xff]   ;;  %v1185_v61 = vsel %vm1183_vm1, %v4287_v56, 0  ;;  %v4373_v56 = vld [vmem:[#allocation8 + $0x1c0] ss:$16 sps:$4 sm:$0xff]  }
  0xc1   :  { %1265 = vmatprep.subr.bf16.mxu0 %v4207_v62  ;;  %1388 = vmatprep.subr.bf16.mxu1 %v4210_v63  ;;  %v1191_v62 = vsel %vm1183_vm1, %v4288_v57, 0  ;;  %v4289_v63 = vld [vmem:[#allocation8] ss:$16 sps:$4 sm:$0xff]   ;;  %v4376_v57 = vld [vmem:[#allocation8 + $0x1c8] ss:$16 sps:$4 sm:$0xff]  }
  0xc4   :  { %1266 = vmatpush1.bf16.msra.mxu0 %v4205_v0  ;;  %1389 = vmatpush1.bf16.msra.mxu1 %v4208_v1  ;;  %v4292_v0 = vld [vmem:[#allocation8 + $0x8] ss:$16 sps:$4 sm:$0xff]   ;;  %v103_v1 = vpack.c.bf16 %v97_v58, %v97_v58  ;;  %v4381_v58 = vld [vmem:[#allocation8 + $0x1e4] ss:$16 sps:$4 sm:$0xff]  }
  0xc5   :  { %1267 = vmatprep.subr.bf16.mxu0 %v4213_v2  ;;  %1390 = vmatprep.subr.bf16.mxu1 %v4216_v3  ;;  %v4297_v2 = vld [vmem:[#allocation8 + $0x24] ss:$16 sps:$4 sm:$0xff]   ;;  %v4300_v3 = vld [vmem:[#allocation8 + $0x2c] ss:$16 sps:$4 sm:$0xff]  }
  0xc8   :  { %1268 = vmatpush1.bf16.msra.mxu0 %v4211_v4  ;;  %1391 = vmatpush1.bf16.msra.mxu1 %v4214_v5  ;;  %v4295_v4 = vld [vmem:[#allocation8 + $0x20] ss:$16 sps:$4 sm:$0xff]   ;;  %v4298_v5 = vld [vmem:[#allocation8 + $0x28] ss:$16 sps:$4 sm:$0xff]  }
  0xc9   :  { %1278 = vmatprep.subr.bf16.mxu0 %v4219_v6  ;;  %1401 = vmatprep.subr.bf16.mxu1 %v4222_v8  ;;  %v4303_v6 = vld [vmem:[#allocation8 + $0x44] ss:$16 sps:$4 sm:$0xff]   ;;  %v4301_v8 = vld [vmem:[#allocation8 + $0x40] ss:$16 sps:$4 sm:$0xff]  }
  0xcb   :  { %1270 = vmatmul.mubr.bf16.vlgmr.msra.gmra.mrb[0].mxu0 %v101_v10  ;;  %1393 = vmatmul.mubr.bf16.vlgmr.msra.gmra.mrb[0].mxu1 %v101_v10  ;;  %v4309_v10 = vld [vmem:[#allocation8 + $0x64] ss:$16 sps:$4 sm:$0xff]  }
  0xcc   :  { %1279 = vmatpush1.bf16.msra.mxu0 %v4217_v9  ;;  %1402 = vmatpush1.bf16.msra.mxu1 %v4220_v12  ;;  %v4304_v9 = vld [vmem:[#allocation8 + $0x48] ss:$16 sps:$4 sm:$0xff]   ;;  %v4307_v12 = vld [vmem:[#allocation8 + $0x60] ss:$16 sps:$4 sm:$0xff]  }
  0xcd   :  { %1280 = vmatprep.subr.bf16.mxu0 %v4225_v13  ;;  %1403 = vmatprep.subr.bf16.mxu1 %v4228_v14  ;;  %v4310_v13 = vld [vmem:[#allocation8 + $0x68] ss:$16 sps:$4 sm:$0xff]   ;;  %v4315_v14 = vld [vmem:[#allocation8 + $0x84] ss:$16 sps:$4 sm:$0xff]  }
  0xce   :  { %3701 = vmatprep.mubr.msk.bf16.mxu0 %vm1179_vm0, %v104_v15  ;;  %3703 = vmatprep.mubr.msk.bf16.mxu1 %vm1179_vm0, %v104_v15  ;;  %v4318_v15 = vld [vmem:[#allocation8 + $0x8c] ss:$16 sps:$4 sm:$0xff]  }
  0xd0   :  { %1281 = vmatpush1.bf16.msra.mxu0 %v4223_v16  ;;  %1404 = vmatpush1.bf16.msra.mxu1 %v4226_v17  ;;  %v4313_v16 = vld [vmem:[#allocation8 + $0x80] ss:$16 sps:$4 sm:$0xff]   ;;  %v4316_v17 = vld [vmem:[#allocation8 + $0x88] ss:$16 sps:$4 sm:$0xff]  }
  0xd1   :  { %1282 = vmatprep.subr.bf16.mxu0 %v4231_v18  ;;  %1405 = vmatprep.subr.bf16.mxu1 %v4234_v19  ;;  %v4321_v18 = vld [vmem:[#allocation8 + $0xa4] ss:$16 sps:$4 sm:$0xff]   ;;  %v4324_v19 = vld [vmem:[#allocation8 + $0xac] ss:$16 sps:$4 sm:$0xff]  }
  0xd4   :  { %1283 = vmatpush1.bf16.msra.mxu0 %v4229_v20  ;;  %1406 = vmatpush1.bf16.msra.mxu1 %v4232_v21  ;;  %v4319_v20 = vld [vmem:[#allocation8 + $0xa0] ss:$16 sps:$4 sm:$0xff]   ;;  %v4322_v21 = vld [vmem:[#allocation8 + $0xa8] ss:$16 sps:$4 sm:$0xff]  }
  0xd5   :  { %1284 = vmatprep.subr.bf16.mxu0 %v4237_v22  ;;  %1407 = vmatprep.subr.bf16.mxu1 %v4240_v23  ;;  %v4327_v22 = vld [vmem:[#allocation8 + $0xc4] ss:$16 sps:$4 sm:$0xff]   ;;  %v4330_v23 = vld [vmem:[#allocation8 + $0xcc] ss:$16 sps:$4 sm:$0xff]  }
  0xd8   :  { %1285 = vmatpush1.bf16.msra.mxu0 %v4235_v24  ;;  %1408 = vmatpush1.bf16.msra.mxu1 %v4238_v25  ;;  %v4325_v24 = vld [vmem:[#allocation8 + $0xc0] ss:$16 sps:$4 sm:$0xff]   ;;  %v4328_v25 = vld [vmem:[#allocation8 + $0xc8] ss:$16 sps:$4 sm:$0xff]  }
  0xd9   :  { %1286 = vmatprep.subr.bf16.mxu0 %v4243_v26  ;;  %1409 = vmatprep.subr.bf16.mxu1 %v4246_v27  ;;  %v4333_v26 = vld [vmem:[#allocation8 + $0xe4] ss:$16 sps:$4 sm:$0xff]   ;;  %v4336_v27 = vld [vmem:[#allocation8 + $0xec] ss:$16 sps:$4 sm:$0xff]  }
  0xdc   :  { %1287 = vmatpush1.bf16.msra.mxu0 %v4241_v28  ;;  %1410 = vmatpush1.bf16.msra.mxu1 %v4244_v29  ;;  %v4331_v28 = vld [vmem:[#allocation8 + $0xe0] ss:$16 sps:$4 sm:$0xff]   ;;  %v4334_v29 = vld [vmem:[#allocation8 + $0xe8] ss:$16 sps:$4 sm:$0xff]  }
  0xdd   :  { %1288 = vmatprep.subr.bf16.mxu0 %v4249_v30  ;;  %1411 = vmatprep.subr.bf16.mxu1 %v4252_v31  ;;  %v4339_v30 = vld [vmem:[#allocation8 + $0x104] ss:$16 sps:$4 sm:$0xff]   ;;  %v4342_v31 = vld [vmem:[#allocation8 + $0x10c] ss:$16 sps:$4 sm:$0xff]  }
  0xe0   :  { %1289 = vmatpush1.bf16.msra.mxu0 %v4247_v32  ;;  %1412 = vmatpush1.bf16.msra.mxu1 %v4250_v33  ;;  %v4337_v32 = vld [vmem:[#allocation8 + $0x100] ss:$16 sps:$4 sm:$0xff]   ;;  %v4340_v33 = vld [vmem:[#allocation8 + $0x108] ss:$16 sps:$4 sm:$0xff]  }
  0xe1   :  { %1290 = vmatprep.subr.bf16.mxu0 %v4255_v34  ;;  %1413 = vmatprep.subr.bf16.mxu1 %v4258_v35  ;;  %v4345_v34 = vld [vmem:[#allocation8 + $0x124] ss:$16 sps:$4 sm:$0xff]   ;;  %v4348_v35 = vld [vmem:[#allocation8 + $0x12c] ss:$16 sps:$4 sm:$0xff]  }
  0xe4   :  { %1291 = vmatpush1.bf16.msra.mxu0 %v4253_v36  ;;  %1414 = vmatpush1.bf16.msra.mxu1 %v4256_v37  ;;  %v4343_v36 = vld [vmem:[#allocation8 + $0x120] ss:$16 sps:$4 sm:$0xff]   ;;  %v4346_v37 = vld [vmem:[#allocation8 + $0x128] ss:$16 sps:$4 sm:$0xff]  }
  0xe5   :  { %1292 = vmatprep.subr.bf16.mxu0 %v4261_v38  ;;  %1415 = vmatprep.subr.bf16.mxu1 %v4264_v39  ;;  %v4351_v38 = vld [vmem:[#allocation8 + $0x144] ss:$16 sps:$4 sm:$0xff]   ;;  %v4354_v39 = vld [vmem:[#allocation8 + $0x14c] ss:$16 sps:$4 sm:$0xff]  }
  0xe8   :  { %1293 = vmatpush1.bf16.msra.mxu0 %v4259_v40  ;;  %1416 = vmatpush1.bf16.msra.mxu1 %v4262_v41  ;;  %v4349_v40 = vld [vmem:[#allocation8 + $0x140] ss:$16 sps:$4 sm:$0xff]   ;;  %v4352_v41 = vld [vmem:[#allocation8 + $0x148] ss:$16 sps:$4 sm:$0xff]  }
  0xe9   :  { %1294 = vmatprep.subr.bf16.mxu0 %v4267_v42  ;;  %1417 = vmatprep.subr.bf16.mxu1 %v4270_v43  ;;  %v4357_v42 = vld [vmem:[#allocation8 + $0x164] ss:$16 sps:$4 sm:$0xff]   ;;  %v4360_v43 = vld [vmem:[#allocation8 + $0x16c] ss:$16 sps:$4 sm:$0xff]  }
  0xec   :  { %1295 = vmatpush1.bf16.msra.mxu0 %v4265_v44  ;;  %1418 = vmatpush1.bf16.msra.mxu1 %v4268_v45  ;;  %v4355_v44 = vld [vmem:[#allocation8 + $0x160] ss:$16 sps:$4 sm:$0xff]   ;;  %v4358_v45 = vld [vmem:[#allocation8 + $0x168] ss:$16 sps:$4 sm:$0xff]  }
  0xed   :  { %1296 = vmatprep.subr.bf16.mxu0 %v4273_v46  ;;  %1419 = vmatprep.subr.bf16.mxu1 %v4276_v47  ;;  %v4363_v46 = vld [vmem:[#allocation8 + $0x184] ss:$16 sps:$4 sm:$0xff]   ;;  %v4366_v47 = vld [vmem:[#allocation8 + $0x18c] ss:$16 sps:$4 sm:$0xff]  }
  0xf0   :  { %1297 = vmatpush1.bf16.msra.mxu0 %v4271_v48  ;;  %1420 = vmatpush1.bf16.msra.mxu1 %v4274_v49  ;;  %v4361_v48 = vld [vmem:[#allocation8 + $0x180] ss:$16 sps:$4 sm:$0xff]   ;;  %v4364_v49 = vld [vmem:[#allocation8 + $0x188] ss:$16 sps:$4 sm:$0xff]  }
  0xf1   :  { %1298 = vmatprep.subr.bf16.mxu0 %v4279_v50  ;;  %1421 = vmatprep.subr.bf16.mxu1 %v4282_v51  ;;  %v4369_v50 = vld [vmem:[#allocation8 + $0x1a4] ss:$16 sps:$4 sm:$0xff]   ;;  %v4372_v51 = vld [vmem:[#allocation8 + $0x1ac] ss:$16 sps:$4 sm:$0xff]  }
  0xf4   :  { %1299 = vmatpush1.bf16.msra.mxu0 %v4277_v52  ;;  %1422 = vmatpush1.bf16.msra.mxu1 %v4280_v53  ;;  %v4367_v52 = vld [vmem:[#allocation8 + $0x1a0] ss:$16 sps:$4 sm:$0xff]   ;;  %v4370_v53 = vld [vmem:[#allocation8 + $0x1a8] ss:$16 sps:$4 sm:$0xff]  }
  0xf5   :  { %3700 = vmatprep.subr.msk.bf16.mxu0 %vm1183_vm1, %v4283_v54  ;;  %3702 = vmatprep.subr.msk.bf16.mxu1 %vm1183_vm1, %v4285_v55  ;;  %v4375_v54 = vld [vmem:[#allocation8 + $0x1c4] ss:$16 sps:$4 sm:$0xff]   ;;  %v4378_v55 = vld [vmem:[#allocation8 + $0x1cc] ss:$16 sps:$4 sm:$0xff]  }
  0xf8   :  { %1301 = vmatpush1.bf16.msra.mxu0 %v1185_v61  ;;  %1424 = vmatpush1.bf16.msra.mxu1 %v1191_v62  ;;  %v4382_v61 = vld [vmem:[#allocation8 + $0x1e8] ss:$16 sps:$4 sm:$0xff]   ;;  %v4387_v62 = vld [vmem:[#allocation8 + $0x204] ss:$16 sps:$4 sm:$0xff]  }
  0xf9   :  { %2248 = vmatprep.subr.bf16.mxu0 %v4291_v59  ;;  %2330 = vmatprep.subr.bf16.mxu1 %v4294_v60  ;;  %v4384_v59 = vld [vmem:[#allocation8 + $0x1ec] ss:$16 sps:$4 sm:$0xff]   ;;  %v4379_v60 = vld [vmem:[#allocation8 + $0x1e0] ss:$16 sps:$4 sm:$0xff]  }
  0xfb   :  { %1311 = vmatmul.mubr.bf16.vlgmr.msra.gmra.mrb[0].mxu0 %v103_v1  ;;  %1434 = vmatmul.mubr.bf16.vlgmr.msra.gmra.mrb[0].mxu1 %v103_v1 }
  0xfc   :  { %2249 = vmatpush1.bf16.msra.mxu0 %v4289_v63  ;;  %2331 = vmatpush1.bf16.msra.mxu1 %v4292_v0  ;;  %v4390_v63 = vld [vmem:[#allocation8 + $0x20c] ss:$16 sps:$4 sm:$0xff]   ;;  %v283_v0 = vlaneseq }
  0xfd   :  { %2250 = vmatprep.subr.bf16.mxu0 %v4297_v2  ;;  %2332 = vmatprep.subr.bf16.mxu1 %v4300_v3 }
  0xfe   :  { %v284_v1 = vshrl.u32 %v283_v0, 7  ;;  %v4427_v0 = vld [vmem:[#allocation8 + $0x2e0] ss:$16 sps:$4 sm:$0xff]  }
 0x100   :  { %2251 = vmatpush1.bf16.msra.mxu0 %v4295_v4  ;;  %2333 = vmatpush1.bf16.msra.mxu1 %v4298_v5  ;;  %v4968_v2 = vsub.s32 0, %v284_v1  ;;  %v4970_v3 = vsub.s32 2, %v284_v1  ;;  %v281_v4 = vld [vmem:[%s5058_s2] sm:$0xf]  ;;  %v4975_v5 = vsub.s32 1, %v284_v1 }
 0x101   :  { %2252 = vmatprep.subr.bf16.mxu0 %v4303_v6  ;;  %2334 = vmatprep.subr.bf16.mxu1 %v4306_v7  ;;  %v4977_v6 = vsub.s32 3, %v284_v1  ;;  %v4430_v1 = vld [vmem:[#allocation8 + $0x2e8] ss:$16 sps:$4 sm:$0xff]  }
 0x102   :  { %v286_v7 = vrot.slane %v281_v4, %v4968_v2 }
 0x104   :  { %2253 = vmatpush1.bf16.msra.mxu0 %v4301_v8  ;;  %2335 = vmatpush1.bf16.msra.mxu1 %v4304_v9  ;;  %v294_v8 = vrot.slane %v281_v4, %v4970_v3  ;;  %v290_v9 = vrot.slane %v281_v4, %v4975_v5 }
 0x105   :  { %2254 = vmatprep.subr.bf16.mxu0 %v4309_v10  ;;  %2336 = vmatprep.subr.bf16.mxu1 %v4312_v11  ;;  %v298_v10 = vrot.slane %v281_v4, %v4977_v6  ;;  %v4435_v4 = vld [vmem:[#allocation8 + $0x304] ss:$16 sps:$4 sm:$0xff]  }
 0x108   :  { %2255 = vmatpush1.bf16.msra.mxu0 %v4307_v12  ;;  %2337 = vmatpush1.bf16.msra.mxu1 %v4310_v13 }
 0x109   :  { %2256 = vmatprep.subr.bf16.mxu0 %v4315_v14  ;;  %2338 = vmatprep.subr.bf16.mxu1 %v4318_v15 }
 0x10c   :  { %2257 = vmatpush1.bf16.msra.mxu0 %v4313_v16  ;;  %2339 = vmatpush1.bf16.msra.mxu1 %v4316_v17 }
 0x10d   :  { %2258 = vmatprep.subr.bf16.mxu0 %v4321_v18  ;;  %2340 = vmatprep.subr.bf16.mxu1 %v4324_v19 }
 0x110   :  { %2259 = vmatpush1.bf16.msra.mxu0 %v4319_v20  ;;  %2341 = vmatpush1.bf16.msra.mxu1 %v4322_v21 }
 0x111   :  { %2260 = vmatprep.subr.bf16.mxu0 %v4327_v22  ;;  %2342 = vmatprep.subr.bf16.mxu1 %v4330_v23 }
 0x114   :  { %2261 = vmatpush1.bf16.msra.mxu0 %v4325_v24  ;;  %2343 = vmatpush1.bf16.msra.mxu1 %v4328_v25 }
 0x115   :  { %2262 = vmatprep.subr.bf16.mxu0 %v4333_v26  ;;  %2344 = vmatprep.subr.bf16.mxu1 %v4336_v27 }
 0x118   :  { %2263 = vmatpush1.bf16.msra.mxu0 %v4331_v28  ;;  %2345 = vmatpush1.bf16.msra.mxu1 %v4334_v29 }
 0x119   :  { %2264 = vmatprep.subr.bf16.mxu0 %v4339_v30  ;;  %2346 = vmatprep.subr.bf16.mxu1 %v4342_v31 }
 0x11c   :  { %2265 = vmatpush1.bf16.msra.mxu0 %v4337_v32  ;;  %2347 = vmatpush1.bf16.msra.mxu1 %v4340_v33  ;;  %v4385_v32 = vld [vmem:[#allocation8 + $0x200] ss:$16 sps:$4 sm:$0xff]   ;;  %v4388_v33 = vld [vmem:[#allocation8 + $0x208] ss:$16 sps:$4 sm:$0xff]  }
 0x11d   :  { %2266 = vmatprep.subr.bf16.mxu0 %v4345_v34  ;;  %2348 = vmatprep.subr.bf16.mxu1 %v4348_v35 }
 0x120   :  { %2267 = vmatpush1.bf16.msra.mxu0 %v4343_v36  ;;  %2349 = vmatpush1.bf16.msra.mxu1 %v4346_v37  ;;  %v4393_v37 = vld [vmem:[#allocation8 + $0x224] ss:$16 sps:$4 sm:$0xff]  }
 0x121   :  { %2268 = vmatprep.subr.bf16.mxu0 %v4351_v38  ;;  %2350 = vmatprep.subr.bf16.mxu1 %v4354_v39  ;;  %v4396_v38 = vld [vmem:[#allocation8 + $0x22c] ss:$16 sps:$4 sm:$0xff]  }
 0x124   :  { %2269 = vmatpush1.bf16.msra.mxu0 %v4349_v40  ;;  %2351 = vmatpush1.bf16.msra.mxu1 %v4352_v41  ;;  %v4391_v40 = vld [vmem:[#allocation8 + $0x220] ss:$16 sps:$4 sm:$0xff]   ;;  %v4394_v41 = vld [vmem:[#allocation8 + $0x228] ss:$16 sps:$4 sm:$0xff]  }
 0x125   :  { %2270 = vmatprep.subr.bf16.mxu0 %v4357_v42  ;;  %2352 = vmatprep.subr.bf16.mxu1 %v4360_v43  ;;  %v4399_v42 = vld [vmem:[#allocation8 + $0x244] ss:$16 sps:$4 sm:$0xff]   ;;  %v4402_v43 = vld [vmem:[#allocation8 + $0x24c] ss:$16 sps:$4 sm:$0xff]  }
 0x128   :  { %2271 = vmatpush1.bf16.msra.mxu0 %v4355_v44  ;;  %2353 = vmatpush1.bf16.msra.mxu1 %v4358_v45  ;;  %v4397_v44 = vld [vmem:[#allocation8 + $0x240] ss:$16 sps:$4 sm:$0xff]   ;;  %v4400_v45 = vld [vmem:[#allocation8 + $0x248] ss:$16 sps:$4 sm:$0xff]  }
 0x129   :  { %2272 = vmatprep.subr.bf16.mxu0 %v4363_v46  ;;  %2354 = vmatprep.subr.bf16.mxu1 %v4366_v47  ;;  %v4405_v46 = vld [vmem:[#allocation8 + $0x264] ss:$16 sps:$4 sm:$0xff]   ;;  %v4408_v47 = vld [vmem:[#allocation8 + $0x26c] ss:$16 sps:$4 sm:$0xff]  }
 0x12c   :  { %2273 = vmatpush1.bf16.msra.mxu0 %v4361_v48  ;;  %2355 = vmatpush1.bf16.msra.mxu1 %v4364_v49  ;;  %v4403_v48 = vld [vmem:[#allocation8 + $0x260] ss:$16 sps:$4 sm:$0xff]   ;;  %v4406_v49 = vld [vmem:[#allocation8 + $0x268] ss:$16 sps:$4 sm:$0xff]  }
 0x12d   :  { %2274 = vmatprep.subr.bf16.mxu0 %v4369_v50  ;;  %2356 = vmatprep.subr.bf16.mxu1 %v4372_v51  ;;  %v4411_v50 = vld [vmem:[#allocation8 + $0x284] ss:$16 sps:$4 sm:$0xff]   ;;  %v4414_v51 = vld [vmem:[#allocation8 + $0x28c] ss:$16 sps:$4 sm:$0xff]  }
 0x130   :  { %2275 = vmatpush1.bf16.msra.mxu0 %v4367_v52  ;;  %2357 = vmatpush1.bf16.msra.mxu1 %v4370_v53  ;;  %v4409_v52 = vld [vmem:[#allocation8 + $0x280] ss:$16 sps:$4 sm:$0xff]   ;;  %v4412_v53 = vld [vmem:[#allocation8 + $0x288] ss:$16 sps:$4 sm:$0xff]  }
 0x131   :  { %2276 = vmatprep.subr.bf16.mxu0 %v4375_v54  ;;  %2358 = vmatprep.subr.bf16.mxu1 %v4378_v55  ;;  %v4417_v54 = vld [vmem:[#allocation8 + $0x2a4] ss:$16 sps:$4 sm:$0xff]   ;;  %v4420_v55 = vld [vmem:[#allocation8 + $0x2ac] ss:$16 sps:$4 sm:$0xff]  }
 0x134   :  { %2277 = vmatpush1.bf16.msra.mxu0 %v4373_v56  ;;  %2359 = vmatpush1.bf16.msra.mxu1 %v4376_v57  ;;  %v4415_v56 = vld [vmem:[#allocation8 + $0x2a0] ss:$16 sps:$4 sm:$0xff]   ;;  %v4418_v57 = vld [vmem:[#allocation8 + $0x2a8] ss:$16 sps:$4 sm:$0xff]  }
 0x135   :  { %2278 = vmatprep.subr.bf16.mxu0 %v4381_v58  ;;  %2360 = vmatprep.subr.bf16.mxu1 %v4384_v59  ;;  %v4423_v58 = vld [vmem:[#allocation8 + $0x2c4] ss:$16 sps:$4 sm:$0xff]   ;;  %v4426_v59 = vld [vmem:[#allocation8 + $0x2cc] ss:$16 sps:$4 sm:$0xff]  }
 0x138   :  { %2279 = vmatpush1.bf16.msra.mxu0 %v4379_v60  ;;  %2361 = vmatpush1.bf16.msra.mxu1 %v4382_v61  ;;  %v4421_v60 = vld [vmem:[#allocation8 + $0x2c0] ss:$16 sps:$4 sm:$0xff]   ;;  %v4424_v61 = vld [vmem:[#allocation8 + $0x2c8] ss:$16 sps:$4 sm:$0xff]  }
 0x139   :  { %2289 = vmatprep.subr.bf16.mxu0 %v4387_v62  ;;  %2371 = vmatprep.subr.bf16.mxu1 %v4390_v63  ;;  %v4429_v62 = vld [vmem:[#allocation8 + $0x2e4] ss:$16 sps:$4 sm:$0xff]   ;;  %v4432_v63 = vld [vmem:[#allocation8 + $0x2ec] ss:$16 sps:$4 sm:$0xff]  }
 0x1ce   :  { %v1312_v11 = vpop.f32.mrb[0].mxu0  ;;  %v1435_v12 = vpop.f32.mrb[0].mxu1 }
 0x1cf   :  { %v3972_v13 = vadd.f32 %v1312_v11, %v286_v7  ;;  %v3974_v14 = vadd.f32 %v1435_v12, %v294_v8  ;;  %v1314_v15 = vpop.f32.mrb[1].mxu0  ;;  %v1437_v16 = vpop.f32.mrb[1].mxu1  ;;  %v4438_v7 = vld [vmem:[#allocation8 + $0x30c] ss:$16 sps:$4 sm:$0xff]   ;;  %v4433_v8 = vld [vmem:[#allocation8 + $0x300] ss:$16 sps:$4 sm:$0xff]  }
 0x1d0   :  { %v3973_v17 = vadd.f32 %v1314_v15, %v290_v9  ;;  %v3975_v18 = vadd.f32 %v1437_v16, %v298_v10  ;;  %v1316_v19 = vpop.f32.mrb[2].mxu0  ;;  %v1439_v20 = vpop.f32.mrb[2].mxu1  ;;  %v4436_v9 = vld [vmem:[#allocation8 + $0x308] ss:$16 sps:$4 sm:$0xff]   ;;  %v4441_v10 = vld [vmem:[#allocation8 + $0x324] ss:$16 sps:$4 sm:$0xff]  }
 0x1d1   :  { %vm1442_vm2 = vcmp.ge.f32.partialorder %v3972_v13, 0.0  ;;  %v1446_v21 = vmul.f32 0.01, %v3972_v13  ;;  %vm1444_vm3 = vcmp.ge.f32.partialorder %v3974_v14, 0.0  ;;  %v1448_v22 = vmul.f32 0.01, %v3974_v14 }
 0x1d2   :  { %vm1443_vm4 = vcmp.ge.f32.partialorder %v3973_v17, 0.0  ;;  %v1447_v23 = vmul.f32 0.01, %v3973_v17  ;;  %vm1445_vm5 = vcmp.ge.f32.partialorder %v3975_v18, 0.0  ;;  %v1449_v24 = vmul.f32 0.01, %v3975_v18 }
 0x1d3   :  { %v1450_v25 = vsel %vm1442_vm2, %v3972_v13, %v1446_v21  ;;  %v4983_v26 = vsel %vm1444_vm3, %v3974_v14, %v1448_v22  ;;  %v1317_v27 = vpop.f32.mrb[3].mxu0  ;;  %v1440_v28 = vpop.f32.mrb[3].mxu1  ;;  %v4444_v11 = vld [vmem:[#allocation8 + $0x32c] ss:$16 sps:$4 sm:$0xff]   ;;  %v4439_v12 = vld [vmem:[#allocation8 + $0x320] ss:$16 sps:$4 sm:$0xff]  }
 0x1d4   :  { %v1451_v29 = vsel %vm1443_vm4, %v3973_v17, %v1447_v23  ;;  %v1453_v30 = vsel %vm1445_vm5, %v3975_v18, %v1449_v24  ;;  %v1454_v36 = vpack.c.bf16 %v1450_v25, %v1450_v25  ;;  %v4442_v13 = vld [vmem:[#allocation8 + $0x328] ss:$16 sps:$4 sm:$0xff]   ;;  %v4447_v14 = vld [vmem:[#allocation8 + $0x344] ss:$16 sps:$4 sm:$0xff]   ;;  %v4450_v15 = vld [vmem:[#allocation8 + $0x34c] ss:$16 sps:$4 sm:$0xff]  }
 0x1d5   :  { %v1455_v31 = vpack.c.bf16 %v1451_v29, %v1451_v29  ;;  %v3966_v34 = vpack.c.bf16 %v1451_v29, %v1450_v25  ;;  %v3967_v35 = vpack.c.bf16 %v1453_v30, %v4983_v26  ;;  %v1457_v39 = vpack.c.bf16 %v1453_v30, %v1453_v30  ;;  %v4445_v16 = vld [vmem:[#allocation8 + $0x340] ss:$16 sps:$4 sm:$0xff]   ;;  %v4448_v17 = vld [vmem:[#allocation8 + $0x348] ss:$16 sps:$4 sm:$0xff]   ;;  %v4453_v18 = vld [vmem:[#allocation8 + $0x364] ss:$16 sps:$4 sm:$0xff]  }
 0x1d6   :  { %v4456_v19 = vld [vmem:[#allocation8 + $0x36c] ss:$16 sps:$4 sm:$0xff]   ;;  %v4451_v20 = vld [vmem:[#allocation8 + $0x360] ss:$16 sps:$4 sm:$0xff]   ;;  %v4454_v21 = vld [vmem:[#allocation8 + $0x368] ss:$16 sps:$4 sm:$0xff]  }
 0x1d7   :  { %2280 = vmatprep.mubr.bf16.mxu0 %v1455_v31  ;;  %2362 = vmatprep.mubr.bf16.mxu1 %v1455_v31  ;;  %3442 = vst [vmem:[#allocation11] sm:$0xff] %v3966_v34  ;;  %3443 = vst [vmem:[#allocation11 + $0x8] sm:$0xff] %v3967_v35  ;;  %v4459_v22 = vld [vmem:[#allocation8 + $0x384] ss:$16 sps:$4 sm:$0xff]   ;;  %v4462_v23 = vld [vmem:[#allocation8 + $0x38c] ss:$16 sps:$4 sm:$0xff]  }
 0x1d8   :  { %2281 = vmatmul.mubr.bf16.vlgmr.msra.gmra.mrb[4].mxu0 %v1454_v36  ;;  %2363 = vmatmul.mubr.bf16.vlgmr.msra.gmra.mrb[4].mxu1 %v1454_v36  ;;  %v4457_v24 = vld [vmem:[#allocation8 + $0x380] ss:$16 sps:$4 sm:$0xff]   ;;  %v4460_v25 = vld [vmem:[#allocation8 + $0x388] ss:$16 sps:$4 sm:$0xff]   ;;  %v4465_v27 = vld [vmem:[#allocation8 + $0x3a4] ss:$16 sps:$4 sm:$0xff]  }
 0x1d9   :  { %2290 = vmatpush1.bf16.msra.mxu0 %v4385_v32  ;;  %2372 = vmatpush1.bf16.msra.mxu1 %v4388_v33  ;;  %v4468_v28 = vld [vmem:[#allocation8 + $0x3ac] ss:$16 sps:$4 sm:$0xff]   ;;  %v4463_v29 = vld [vmem:[#allocation8 + $0x3a0] ss:$16 sps:$4 sm:$0xff]   ;;  %v4466_v30 = vld [vmem:[#allocation8 + $0x3a8] ss:$16 sps:$4 sm:$0xff]  }
 0x1da   :  { %2321 = vmatprep.mubr.bf16.mxu0 %v1457_v39  ;;  %2403 = vmatprep.mubr.bf16.mxu1 %v1457_v39  ;;  %v4471_v31 = vld [vmem:[#allocation8 + $0x3c4] ss:$16 sps:$4 sm:$0xff]   ;;  %v4474_v32 = vld [vmem:[#allocation8 + $0x3cc] ss:$16 sps:$4 sm:$0xff]   ;;  %v4469_v33 = vld [vmem:[#allocation8 + $0x3c0] ss:$16 sps:$4 sm:$0xff]  }
 0x1db   :  { %2291 = vmatprep.subr.bf16.mxu0 %v4393_v37  ;;  %2373 = vmatprep.subr.bf16.mxu1 %v4396_v38  ;;  %v4472_v34 = vld [vmem:[#allocation8 + $0x3c8] ss:$16 sps:$4 sm:$0xff]   ;;  %v4477_v35 = vld [vmem:[#allocation8 + $0x3e4] ss:$16 sps:$4 sm:$0xff]   ;;  %v4480_v36 = vld [vmem:[#allocation8 + $0x3ec] ss:$16 sps:$4 sm:$0xff]  }
 0x1dc   :  { %v4475_v37 = vld [vmem:[#allocation8 + $0x3e0] ss:$16 sps:$4 sm:$0xff]   ;;  %v4478_v38 = vld [vmem:[#allocation8 + $0x3e8] ss:$16 sps:$4 sm:$0xff]   ;;  %v4483_v39 = vld [vmem:[#allocation9 + $0x4] ss:$16 sps:$4 sm:$0xff]  }
 0x1dd   :  { %2292 = vmatpush1.bf16.msra.mxu0 %v4391_v40  ;;  %2374 = vmatpush1.bf16.msra.mxu1 %v4394_v41  ;;  %v4486_v40 = vld [vmem:[#allocation9 + $0xc] ss:$16 sps:$4 sm:$0xff]   ;;  %v4481_v41 = vld [vmem:[#allocation9] ss:$16 sps:$4 sm:$0xff]  }
 0x1de   :  { %2293 = vmatprep.subr.bf16.mxu0 %v4399_v42  ;;  %2375 = vmatprep.subr.bf16.mxu1 %v4402_v43  ;;  %v4484_v42 = vld [vmem:[#allocation9 + $0x8] ss:$16 sps:$4 sm:$0xff]   ;;  %v1456_v43 = vpack.c.bf16 %v4983_v26, %v4983_v26  ;;  %v4501_v26 = vld [vmem:[#allocation9 + $0x64] ss:$16 sps:$4 sm:$0xff]  }
 0x1e1   :  { %2294 = vmatpush1.bf16.msra.mxu0 %v4397_v44  ;;  %2376 = vmatpush1.bf16.msra.mxu1 %v4400_v45  ;;  %v4489_v44 = vld [vmem:[#allocation9 + $0x24] ss:$16 sps:$4 sm:$0xff]   ;;  %v4492_v45 = vld [vmem:[#allocation9 + $0x2c] ss:$16 sps:$4 sm:$0xff]  }
 0x1e2   :  { %2295 = vmatprep.subr.bf16.mxu0 %v4405_v46  ;;  %2377 = vmatprep.subr.bf16.mxu1 %v4408_v47  ;;  %v4487_v46 = vld [vmem:[#allocation9 + $0x20] ss:$16 sps:$4 sm:$0xff]   ;;  %v4490_v47 = vld [vmem:[#allocation9 + $0x28] ss:$16 sps:$4 sm:$0xff]  }
 0x1e5   :  { %2296 = vmatpush1.bf16.msra.mxu0 %v4403_v48  ;;  %2378 = vmatpush1.bf16.msra.mxu1 %v4406_v49  ;;  %v4495_v48 = vld [vmem:[#allocation9 + $0x44] ss:$16 sps:$4 sm:$0xff]   ;;  %v4498_v49 = vld [vmem:[#allocation9 + $0x4c] ss:$16 sps:$4 sm:$0xff]  }
 0x1e6   :  { %2297 = vmatprep.subr.bf16.mxu0 %v4411_v50  ;;  %2379 = vmatprep.subr.bf16.mxu1 %v4414_v51  ;;  %v4493_v50 = vld [vmem:[#allocation9 + $0x40] ss:$16 sps:$4 sm:$0xff]   ;;  %v4496_v51 = vld [vmem:[#allocation9 + $0x48] ss:$16 sps:$4 sm:$0xff]  }
 0x1e9   :  { %2298 = vmatpush1.bf16.msra.mxu0 %v4409_v52  ;;  %2380 = vmatpush1.bf16.msra.mxu1 %v4412_v53  ;;  %v4504_v52 = vld [vmem:[#allocation9 + $0x6c] ss:$16 sps:$4 sm:$0xff]   ;;  %v4499_v53 = vld [vmem:[#allocation9 + $0x60] ss:$16 sps:$4 sm:$0xff]  }
 0x1ea   :  { %2299 = vmatprep.subr.bf16.mxu0 %v4417_v54  ;;  %2381 = vmatprep.subr.bf16.mxu1 %v4420_v55  ;;  %v4502_v54 = vld [vmem:[#allocation9 + $0x68] ss:$16 sps:$4 sm:$0xff]   ;;  %v4507_v55 = vld [vmem:[#allocation9 + $0x84] ss:$16 sps:$4 sm:$0xff]  }
 0x1ed   :  { %2300 = vmatpush1.bf16.msra.mxu0 %v4415_v56  ;;  %2382 = vmatpush1.bf16.msra.mxu1 %v4418_v57  ;;  %v4510_v56 = vld [vmem:[#allocation9 + $0x8c] ss:$16 sps:$4 sm:$0xff]   ;;  %v4505_v57 = vld [vmem:[#allocation9 + $0x80] ss:$16 sps:$4 sm:$0xff]  }
 0x1ee   :  { %2301 = vmatprep.subr.bf16.mxu0 %v4423_v58  ;;  %2383 = vmatprep.subr.bf16.mxu1 %v4426_v59  ;;  %v4508_v58 = vld [vmem:[#allocation9 + $0x88] ss:$16 sps:$4 sm:$0xff]   ;;  %v4513_v59 = vld [vmem:[#allocation9 + $0xa4] ss:$16 sps:$4 sm:$0xff]  }
 0x1f1   :  { %2302 = vmatpush1.bf16.msra.mxu0 %v4421_v60  ;;  %2384 = vmatpush1.bf16.msra.mxu1 %v4424_v61  ;;  %v4516_v60 = vld [vmem:[#allocation9 + $0xac] ss:$16 sps:$4 sm:$0xff]   ;;  %v4511_v61 = vld [vmem:[#allocation9 + $0xa0] ss:$16 sps:$4 sm:$0xff]  }
 0x1f2   :  { %2303 = vmatprep.subr.bf16.mxu0 %v4429_v62  ;;  %2385 = vmatprep.subr.bf16.mxu1 %v4432_v63  ;;  %v4514_v62 = vld [vmem:[#allocation9 + $0xa8] ss:$16 sps:$4 sm:$0xff]   ;;  %v4519_v63 = vld [vmem:[#allocation9 + $0xc4] ss:$16 sps:$4 sm:$0xff]  }
 0x1f5   :  { %2304 = vmatpush1.bf16.msra.mxu0 %v4427_v0  ;;  %2386 = vmatpush1.bf16.msra.mxu1 %v4430_v1  ;;  %v4522_v0 = vld [vmem:[#allocation9 + $0xcc] ss:$16 sps:$4 sm:$0xff]   ;;  %v4517_v1 = vld [vmem:[#allocation9 + $0xc0] ss:$16 sps:$4 sm:$0xff]  }
 0x1f6   :  { %2305 = vmatprep.subr.bf16.mxu0 %v4435_v4  ;;  %2387 = vmatprep.subr.bf16.mxu1 %v4438_v7  ;;  %v4520_v4 = vld [vmem:[#allocation9 + $0xc8] ss:$16 sps:$4 sm:$0xff]   ;;  %v4525_v7 = vld [vmem:[#allocation9 + $0xe4] ss:$16 sps:$4 sm:$0xff]  }
 0x1f9   :  { %2306 = vmatpush1.bf16.msra.mxu0 %v4433_v8  ;;  %2388 = vmatpush1.bf16.msra.mxu1 %v4436_v9  ;;  %v4528_v8 = vld [vmem:[#allocation9 + $0xec] ss:$16 sps:$4 sm:$0xff]   ;;  %v4523_v9 = vld [vmem:[#allocation9 + $0xe0] ss:$16 sps:$4 sm:$0xff]  }
 0x1fa   :  { %2307 = vmatprep.subr.bf16.mxu0 %v4441_v10  ;;  %2389 = vmatprep.subr.bf16.mxu1 %v4444_v11  ;;  %v4526_v10 = vld [vmem:[#allocation9 + $0xe8] ss:$16 sps:$4 sm:$0xff]   ;;  %v4531_v11 = vld [vmem:[#allocation9 + $0x104] ss:$16 sps:$4 sm:$0xff]  }
 0x1fd   :  { %2308 = vmatpush1.bf16.msra.mxu0 %v4439_v12  ;;  %2390 = vmatpush1.bf16.msra.mxu1 %v4442_v13  ;;  %v4534_v12 = vld [vmem:[#allocation9 + $0x10c] ss:$16 sps:$4 sm:$0xff]   ;;  %v4529_v13 = vld [vmem:[#allocation9 + $0x100] ss:$16 sps:$4 sm:$0xff]  }
 0x1fe   :  { %2309 = vmatprep.subr.bf16.mxu0 %v4447_v14  ;;  %2391 = vmatprep.subr.bf16.mxu1 %v4450_v15  ;;  %v4532_v14 = vld [vmem:[#allocation9 + $0x108] ss:$16 sps:$4 sm:$0xff]   ;;  %v4537_v15 = vld [vmem:[#allocation9 + $0x124] ss:$16 sps:$4 sm:$0xff]  }
 0x201   :  { %2310 = vmatpush1.bf16.msra.mxu0 %v4445_v16  ;;  %2392 = vmatpush1.bf16.msra.mxu1 %v4448_v17  ;;  %v4540_v16 = vld [vmem:[#allocation9 + $0x12c] ss:$16 sps:$4 sm:$0xff]   ;;  %v4535_v17 = vld [vmem:[#allocation9 + $0x120] ss:$16 sps:$4 sm:$0xff]  }
 0x202   :  { %2311 = vmatprep.subr.bf16.mxu0 %v4453_v18  ;;  %2393 = vmatprep.subr.bf16.mxu1 %v4456_v19  ;;  %v4538_v18 = vld [vmem:[#allocation9 + $0x128] ss:$16 sps:$4 sm:$0xff]   ;;  %v4543_v19 = vld [vmem:[#allocation9 + $0x144] ss:$16 sps:$4 sm:$0xff]  }
 0x205   :  { %2312 = vmatpush1.bf16.msra.mxu0 %v4451_v20  ;;  %2394 = vmatpush1.bf16.msra.mxu1 %v4454_v21  ;;  %v4546_v20 = vld [vmem:[#allocation9 + $0x14c] ss:$16 sps:$4 sm:$0xff]   ;;  %v4541_v21 = vld [vmem:[#allocation9 + $0x140] ss:$16 sps:$4 sm:$0xff]  }
 0x206   :  { %2313 = vmatprep.subr.bf16.mxu0 %v4459_v22  ;;  %2395 = vmatprep.subr.bf16.mxu1 %v4462_v23  ;;  %v4544_v22 = vld [vmem:[#allocation9 + $0x148] ss:$16 sps:$4 sm:$0xff]   ;;  %v4549_v23 = vld [vmem:[#allocation9 + $0x164] ss:$16 sps:$4 sm:$0xff]  }
 0x209   :  { %2314 = vmatpush1.bf16.msra.mxu0 %v4457_v24  ;;  %2396 = vmatpush1.bf16.msra.mxu1 %v4460_v25  ;;  %v4552_v24 = vld [vmem:[#allocation9 + $0x16c] ss:$16 sps:$4 sm:$0xff]   ;;  %v4547_v25 = vld [vmem:[#allocation9 + $0x160] ss:$16 sps:$4 sm:$0xff]  }
 0x20a   :  { %2315 = vmatprep.subr.bf16.mxu0 %v4465_v27  ;;  %2397 = vmatprep.subr.bf16.mxu1 %v4468_v28  ;;  %v4550_v27 = vld [vmem:[#allocation9 + $0x168] ss:$16 sps:$4 sm:$0xff]   ;;  %v4555_v28 = vld [vmem:[#allocation9 + $0x184] ss:$16 sps:$4 sm:$0xff]  }
 0x20d   :  { %2316 = vmatpush1.bf16.msra.mxu0 %v4463_v29  ;;  %2398 = vmatpush1.bf16.msra.mxu1 %v4466_v30  ;;  %v4558_v29 = vld [vmem:[#allocation9 + $0x18c] ss:$16 sps:$4 sm:$0xff]   ;;  %v4553_v30 = vld [vmem:[#allocation9 + $0x180] ss:$16 sps:$4 sm:$0xff]  }
 0x20e   :  { %2317 = vmatprep.subr.bf16.mxu0 %v4471_v31  ;;  %2399 = vmatprep.subr.bf16.mxu1 %v4474_v32  ;;  %v4556_v31 = vld [vmem:[#allocation9 + $0x188] ss:$16 sps:$4 sm:$0xff]   ;;  %v4561_v32 = vld [vmem:[#allocation9 + $0x1a4] ss:$16 sps:$4 sm:$0xff]  }
 0x211   :  { %2318 = vmatpush1.bf16.msra.mxu0 %v4469_v33  ;;  %2400 = vmatpush1.bf16.msra.mxu1 %v4472_v34  ;;  %v4564_v33 = vld [vmem:[#allocation9 + $0x1ac] ss:$16 sps:$4 sm:$0xff]   ;;  %v4559_v34 = vld [vmem:[#allocation9 + $0x1a0] ss:$16 sps:$4 sm:$0xff]  }
 0x212   :  { %2319 = vmatprep.subr.bf16.mxu0 %v4477_v35  ;;  %2401 = vmatprep.subr.bf16.mxu1 %v4480_v36  ;;  %v4562_v35 = vld [vmem:[#allocation9 + $0x1a8] ss:$16 sps:$4 sm:$0xff]   ;;  %v4567_v36 = vld [vmem:[#allocation9 + $0x1c4] ss:$16 sps:$4 sm:$0xff]  }
 0x215   :  { %2320 = vmatpush1.bf16.msra.mxu0 %v4475_v37  ;;  %2402 = vmatpush1.bf16.msra.mxu1 %v4478_v38  ;;  %v4570_v37 = vld [vmem:[#allocation9 + $0x1cc] ss:$16 sps:$4 sm:$0xff]   ;;  %v4565_v38 = vld [vmem:[#allocation9 + $0x1c0] ss:$16 sps:$4 sm:$0xff]  }
 0x216   :  { %3218 = vmatprep.subr.bf16.mxu0 %v4483_v39  ;;  %3300 = vmatprep.subr.bf16.mxu1 %v4486_v40  ;;  %v4568_v39 = vld [vmem:[#allocation9 + $0x1c8] ss:$16 sps:$4 sm:$0xff]   ;;  %v4573_v40 = vld [vmem:[#allocation9 + $0x1e4] ss:$16 sps:$4 sm:$0xff]  }
 0x218   :  { %2322 = vmatmul.mubr.bf16.vlgmr.msra.gmra.mrb[4].mxu0 %v1456_v43  ;;  %2404 = vmatmul.mubr.bf16.vlgmr.msra.gmra.mrb[4].mxu1 %v1456_v43  ;;  %v4574_v43 = vld [vmem:[#allocation9 + $0x1e8] ss:$16 sps:$4 sm:$0xff]  }
 0x219   :  { %3219 = vmatpush1.bf16.msra.mxu0 %v4481_v41  ;;  %3301 = vmatpush1.bf16.msra.mxu1 %v4484_v42  ;;  %v4576_v41 = vld [vmem:[#allocation9 + $0x1ec] ss:$16 sps:$4 sm:$0xff]   ;;  %v4571_v42 = vld [vmem:[#allocation9 + $0x1e0] ss:$16 sps:$4 sm:$0xff]  }
 0x21a   :  { %3220 = vmatprep.subr.bf16.mxu0 %v4489_v44  ;;  %3302 = vmatprep.subr.bf16.mxu1 %v4492_v45  ;;  %v4579_v44 = vld [vmem:[#allocation9 + $0x204] ss:$16 sps:$4 sm:$0xff]   ;;  %v4582_v45 = vld [vmem:[#allocation9 + $0x20c] ss:$16 sps:$4 sm:$0xff]  }
 0x21d   :  { %3221 = vmatpush1.bf16.msra.mxu0 %v4487_v46  ;;  %3303 = vmatpush1.bf16.msra.mxu1 %v4490_v47  ;;  %v1586_v46 = vld [vmem:[%s5060_s4] sm:$0xf] }
 0x21e   :  { %3222 = vmatprep.subr.bf16.mxu0 %v4495_v48  ;;  %3304 = vmatprep.subr.bf16.mxu1 %v4498_v49  ;;  %v1591_v47 = vrot.slane %v1586_v46, %v4968_v2  ;;  %v1599_v48 = vrot.slane %v1586_v46, %v4970_v3  ;;  %v1595_v49 = vrot.slane %v1586_v46, %v4975_v5 }
 0x221   :  { %3223 = vmatpush1.bf16.msra.mxu0 %v4493_v50  ;;  %3305 = vmatpush1.bf16.msra.mxu1 %v4496_v51  ;;  %v1603_v50 = vrot.slane %v1586_v46, %v4977_v6  ;;  %v4627_v46 = vld [vmem:[#allocation9 + $0x304] ss:$16 sps:$4 sm:$0xff]  }
 0x222   :  { %3224 = vmatprep.subr.bf16.mxu0 %v4501_v26  ;;  %3306 = vmatprep.subr.bf16.mxu1 %v4504_v52 }
 0x225   :  { %3225 = vmatpush1.bf16.msra.mxu0 %v4499_v53  ;;  %3307 = vmatpush1.bf16.msra.mxu1 %v4502_v54 }
 0x226   :  { %3226 = vmatprep.subr.bf16.mxu0 %v4507_v55  ;;  %3308 = vmatprep.subr.bf16.mxu1 %v4510_v56 }
 0x229   :  { %3227 = vmatpush1.bf16.msra.mxu0 %v4505_v57  ;;  %3309 = vmatpush1.bf16.msra.mxu1 %v4508_v58 }
 0x22a   :  { %3228 = vmatprep.subr.bf16.mxu0 %v4513_v59  ;;  %3310 = vmatprep.subr.bf16.mxu1 %v4516_v60 }
 0x22d   :  { %3229 = vmatpush1.bf16.msra.mxu0 %v4511_v61  ;;  %3311 = vmatpush1.bf16.msra.mxu1 %v4514_v62 }
 0x22e   :  { %3230 = vmatprep.subr.bf16.mxu0 %v4519_v63  ;;  %3312 = vmatprep.subr.bf16.mxu1 %v4522_v0 }
 0x231   :  { %3231 = vmatpush1.bf16.msra.mxu0 %v4517_v1  ;;  %3313 = vmatpush1.bf16.msra.mxu1 %v4520_v4 }
 0x232   :  { %3232 = vmatprep.subr.bf16.mxu0 %v4525_v7  ;;  %3314 = vmatprep.subr.bf16.mxu1 %v4528_v8 }
 0x235   :  { %3233 = vmatpush1.bf16.msra.mxu0 %v4523_v9  ;;  %3315 = vmatpush1.bf16.msra.mxu1 %v4526_v10 }
 0x236   :  { %3234 = vmatprep.subr.bf16.mxu0 %v4531_v11  ;;  %3316 = vmatprep.subr.bf16.mxu1 %v4534_v12  ;;  %v4577_v11 = vld [vmem:[#allocation9 + $0x200] ss:$16 sps:$4 sm:$0xff]   ;;  %v4580_v12 = vld [vmem:[#allocation9 + $0x208] ss:$16 sps:$4 sm:$0xff]  }
 0x239   :  { %3235 = vmatpush1.bf16.msra.mxu0 %v4529_v13  ;;  %3317 = vmatpush1.bf16.msra.mxu1 %v4532_v14 }
 0x23a   :  { %3236 = vmatprep.subr.bf16.mxu0 %v4537_v15  ;;  %3318 = vmatprep.subr.bf16.mxu1 %v4540_v16  ;;  %v4585_v16 = vld [vmem:[#allocation9 + $0x224] ss:$16 sps:$4 sm:$0xff]  }
 0x23d   :  { %3237 = vmatpush1.bf16.msra.mxu0 %v4535_v17  ;;  %3319 = vmatpush1.bf16.msra.mxu1 %v4538_v18  ;;  %v4588_v17 = vld [vmem:[#allocation9 + $0x22c] ss:$16 sps:$4 sm:$0xff]  }
 0x23e   :  { %3238 = vmatprep.subr.bf16.mxu0 %v4543_v19  ;;  %3320 = vmatprep.subr.bf16.mxu1 %v4546_v20  ;;  %v4583_v19 = vld [vmem:[#allocation9 + $0x220] ss:$16 sps:$4 sm:$0xff]   ;;  %v4586_v20 = vld [vmem:[#allocation9 + $0x228] ss:$16 sps:$4 sm:$0xff]  }
 0x241   :  { %3239 = vmatpush1.bf16.msra.mxu0 %v4541_v21  ;;  %3321 = vmatpush1.bf16.msra.mxu1 %v4544_v22  ;;  %v4591_v21 = vld [vmem:[#allocation9 + $0x244] ss:$16 sps:$4 sm:$0xff]   ;;  %v4594_v22 = vld [vmem:[#allocation9 + $0x24c] ss:$16 sps:$4 sm:$0xff]  }
 0x242   :  { %3240 = vmatprep.subr.bf16.mxu0 %v4549_v23  ;;  %3322 = vmatprep.subr.bf16.mxu1 %v4552_v24  ;;  %v4589_v23 = vld [vmem:[#allocation9 + $0x240] ss:$16 sps:$4 sm:$0xff]   ;;  %v4592_v24 = vld [vmem:[#allocation9 + $0x248] ss:$16 sps:$4 sm:$0xff]  }
 0x245   :  { %3241 = vmatpush1.bf16.msra.mxu0 %v4547_v25  ;;  %3323 = vmatpush1.bf16.msra.mxu1 %v4550_v27  ;;  %v4597_v25 = vld [vmem:[#allocation9 + $0x264] ss:$16 sps:$4 sm:$0xff]   ;;  %v4600_v27 = vld [vmem:[#allocation9 + $0x26c] ss:$16 sps:$4 sm:$0xff]  }
 0x246   :  { %3242 = vmatprep.subr.bf16.mxu0 %v4555_v28  ;;  %3324 = vmatprep.subr.bf16.mxu1 %v4558_v29  ;;  %v4595_v28 = vld [vmem:[#allocation9 + $0x260] ss:$16 sps:$4 sm:$0xff]   ;;  %v4598_v29 = vld [vmem:[#allocation9 + $0x268] ss:$16 sps:$4 sm:$0xff]  }
 0x249   :  { %3243 = vmatpush1.bf16.msra.mxu0 %v4553_v30  ;;  %3325 = vmatpush1.bf16.msra.mxu1 %v4556_v31  ;;  %v4603_v30 = vld [vmem:[#allocation9 + $0x284] ss:$16 sps:$4 sm:$0xff]   ;;  %v4606_v31 = vld [vmem:[#allocation9 + $0x28c] ss:$16 sps:$4 sm:$0xff]  }
 0x24a   :  { %3244 = vmatprep.subr.bf16.mxu0 %v4561_v32  ;;  %3326 = vmatprep.subr.bf16.mxu1 %v4564_v33  ;;  %v4601_v32 = vld [vmem:[#allocation9 + $0x280] ss:$16 sps:$4 sm:$0xff]   ;;  %v4604_v33 = vld [vmem:[#allocation9 + $0x288] ss:$16 sps:$4 sm:$0xff]  }
 0x24d   :  { %3245 = vmatpush1.bf16.msra.mxu0 %v4559_v34  ;;  %3327 = vmatpush1.bf16.msra.mxu1 %v4562_v35  ;;  %v4609_v34 = vld [vmem:[#allocation9 + $0x2a4] ss:$16 sps:$4 sm:$0xff]   ;;  %v4612_v35 = vld [vmem:[#allocation9 + $0x2ac] ss:$16 sps:$4 sm:$0xff]  }
 0x24e   :  { %3246 = vmatprep.subr.bf16.mxu0 %v4567_v36  ;;  %3328 = vmatprep.subr.bf16.mxu1 %v4570_v37  ;;  %v4607_v36 = vld [vmem:[#allocation9 + $0x2a0] ss:$16 sps:$4 sm:$0xff]   ;;  %v4610_v37 = vld [vmem:[#allocation9 + $0x2a8] ss:$16 sps:$4 sm:$0xff]  }
 0x251   :  { %3247 = vmatpush1.bf16.msra.mxu0 %v4565_v38  ;;  %3329 = vmatpush1.bf16.msra.mxu1 %v4568_v39  ;;  %v4615_v38 = vld [vmem:[#allocation9 + $0x2c4] ss:$16 sps:$4 sm:$0xff]   ;;  %v4618_v39 = vld [vmem:[#allocation9 + $0x2cc] ss:$16 sps:$4 sm:$0xff]  }
 0x252   :  { %3248 = vmatprep.subr.bf16.mxu0 %v4573_v40  ;;  %3330 = vmatprep.subr.bf16.mxu1 %v4576_v41  ;;  %v4613_v40 = vld [vmem:[#allocation9 + $0x2c0] ss:$16 sps:$4 sm:$0xff]   ;;  %v4616_v41 = vld [vmem:[#allocation9 + $0x2c8] ss:$16 sps:$4 sm:$0xff]  }
 0x255   :  { %3249 = vmatpush1.bf16.msra.mxu0 %v4571_v42  ;;  %3331 = vmatpush1.bf16.msra.mxu1 %v4574_v43  ;;  %v4621_v42 = vld [vmem:[#allocation9 + $0x2e4] ss:$16 sps:$4 sm:$0xff]   ;;  %v4624_v43 = vld [vmem:[#allocation9 + $0x2ec] ss:$16 sps:$4 sm:$0xff]  }
 0x256   :  { %3259 = vmatprep.subr.bf16.mxu0 %v4579_v44  ;;  %3341 = vmatprep.subr.bf16.mxu1 %v4582_v45  ;;  %v4619_v44 = vld [vmem:[#allocation9 + $0x2e0] ss:$16 sps:$4 sm:$0xff]   ;;  %v4622_v45 = vld [vmem:[#allocation9 + $0x2e8] ss:$16 sps:$4 sm:$0xff]  }
 0x2eb   :  { %v2323_v51 = vpop.f32.mrb[4].mxu0  ;;  %v2405_v26 = vpop.f32.mrb[4].mxu1 }
 0x2ec   :  { %v3976_v52 = vadd.f32 %v2323_v51, %v1591_v47  ;;  %v3978_v53 = vadd.f32 %v2405_v26, %v1599_v48  ;;  %v2325_v54 = vpop.f32.mrb[5].mxu0  ;;  %v2407_v55 = vpop.f32.mrb[5].mxu1  ;;  %v4630_v47 = vld [vmem:[#allocation9 + $0x30c] ss:$16 sps:$4 sm:$0xff]   ;;  %v4625_v48 = vld [vmem:[#allocation9 + $0x300] ss:$16 sps:$4 sm:$0xff]  }
 0x2ed   :  { %v3977_v56 = vadd.f32 %v2325_v54, %v1595_v49  ;;  %v3979_v57 = vadd.f32 %v2407_v55, %v1603_v50  ;;  %v2327_v58 = vpop.f32.mrb[6].mxu0  ;;  %v2409_v59 = vpop.f32.mrb[6].mxu1  ;;  %v4628_v49 = vld [vmem:[#allocation9 + $0x308] ss:$16 sps:$4 sm:$0xff]   ;;  %v4633_v50 = vld [vmem:[#allocation9 + $0x324] ss:$16 sps:$4 sm:$0xff]  }
 0x2ee   :  { %vm2412_vm6 = vcmp.ge.f32.partialorder %v3976_v52, 0.0  ;;  %v2416_v60 = vmul.f32 0.01, %v3976_v52  ;;  %vm2414_vm7 = vcmp.ge.f32.partialorder %v3978_v53, 0.0  ;;  %v2418_v61 = vmul.f32 0.01, %v3978_v53 }
 0x2ef   :  { %vm2413_vm8 = vcmp.ge.f32.partialorder %v3977_v56, 0.0  ;;  %v2417_v62 = vmul.f32 0.01, %v3977_v56  ;;  %vm2415_vm9 = vcmp.ge.f32.partialorder %v3979_v57, 0.0  ;;  %v2419_v63 = vmul.f32 0.01, %v3979_v57 }
 0x2f0   :  { %v2420_v0 = vsel %vm2412_vm6, %v3976_v52, %v2416_v60  ;;  %v4995_v1 = vsel %vm2414_vm7, %v3978_v53, %v2418_v61  ;;  %v2328_v4 = vpop.f32.mrb[7].mxu0  ;;  %v2410_v7 = vpop.f32.mrb[7].mxu1  ;;  %v4636_v51 = vld [vmem:[#allocation9 + $0x32c] ss:$16 sps:$4 sm:$0xff]   ;;  %v4631_v26 = vld [vmem:[#allocation9 + $0x320] ss:$16 sps:$4 sm:$0xff]  }
 0x2f1   :  { %v2421_v8 = vsel %vm2413_vm8, %v3977_v56, %v2417_v62  ;;  %v2423_v9 = vsel %vm2415_vm9, %v3979_v57, %v2419_v63  ;;  %v2424_v15 = vpack.c.bf16 %v2420_v0, %v2420_v0  ;;  %v4634_v52 = vld [vmem:[#allocation9 + $0x328] ss:$16 sps:$4 sm:$0xff]   ;;  %v4639_v53 = vld [vmem:[#allocation9 + $0x344] ss:$16 sps:$4 sm:$0xff]   ;;  %v4642_v54 = vld [vmem:[#allocation9 + $0x34c] ss:$16 sps:$4 sm:$0xff]  }
 0x2f2   :  { %v2425_v10 = vpack.c.bf16 %v2421_v8, %v2421_v8  ;;  %v3968_v13 = vpack.c.bf16 %v2421_v8, %v2420_v0  ;;  %v3969_v14 = vpack.c.bf16 %v2423_v9, %v4995_v1  ;;  %v2427_v18 = vpack.c.bf16 %v2423_v9, %v2423_v9  ;;  %v4637_v55 = vld [vmem:[#allocation9 + $0x340] ss:$16 sps:$4 sm:$0xff]   ;;  %v4640_v56 = vld [vmem:[#allocation9 + $0x348] ss:$16 sps:$4 sm:$0xff]   ;;  %v4645_v57 = vld [vmem:[#allocation9 + $0x364] ss:$16 sps:$4 sm:$0xff]  }
 0x2f3   :  { %v4648_v58 = vld [vmem:[#allocation9 + $0x36c] ss:$16 sps:$4 sm:$0xff]   ;;  %v4643_v59 = vld [vmem:[#allocation9 + $0x360] ss:$16 sps:$4 sm:$0xff]   ;;  %v4646_v60 = vld [vmem:[#allocation9 + $0x368] ss:$16 sps:$4 sm:$0xff]  }
 0x2f4   :  { %3250 = vmatprep.mubr.bf16.mxu0 %v2425_v10  ;;  %3332 = vmatprep.mubr.bf16.mxu1 %v2425_v10  ;;  %3456 = vst [vmem:[#allocation12] sm:$0xff] %v3968_v13  ;;  %3457 = vst [vmem:[#allocation12 + $0x8] sm:$0xff] %v3969_v14  ;;  %v4651_v61 = vld [vmem:[#allocation9 + $0x384] ss:$16 sps:$4 sm:$0xff]   ;;  %v4654_v62 = vld [vmem:[#allocation9 + $0x38c] ss:$16 sps:$4 sm:$0xff]  }
 0x2f5   :  { %3251 = vmatmul.mubr.bf16.vlgmr.msra.gmra.mrb[8].mxu0 %v2424_v15  ;;  %3333 = vmatmul.mubr.bf16.vlgmr.msra.gmra.mrb[8].mxu1 %v2424_v15  ;;  %v4649_v63 = vld [vmem:[#allocation9 + $0x380] ss:$16 sps:$4 sm:$0xff]   ;;  %v4652_v0 = vld [vmem:[#allocation9 + $0x388] ss:$16 sps:$4 sm:$0xff]   ;;  %v4657_v4 = vld [vmem:[#allocation9 + $0x3a4] ss:$16 sps:$4 sm:$0xff]  }
 0x2f6   :  { %3260 = vmatpush1.bf16.msra.mxu0 %v4577_v11  ;;  %3342 = vmatpush1.bf16.msra.mxu1 %v4580_v12  ;;  %v4660_v7 = vld [vmem:[#allocation9 + $0x3ac] ss:$16 sps:$4 sm:$0xff]   ;;  %v4655_v8 = vld [vmem:[#allocation9 + $0x3a0] ss:$16 sps:$4 sm:$0xff]   ;;  %v4658_v9 = vld [vmem:[#allocation9 + $0x3a8] ss:$16 sps:$4 sm:$0xff]  }
 0x2f7   :  { %3291 = vmatprep.mubr.bf16.mxu0 %v2427_v18  ;;  %3373 = vmatprep.mubr.bf16.mxu1 %v2427_v18  ;;  %v4663_v10 = vld [vmem:[#allocation9 + $0x3c4] ss:$16 sps:$4 sm:$0xff]   ;;  %v4666_v11 = vld [vmem:[#allocation9 + $0x3cc] ss:$16 sps:$4 sm:$0xff]   ;;  %v4661_v12 = vld [vmem:[#allocation9 + $0x3c0] ss:$16 sps:$4 sm:$0xff]   ;;  %v2426_v18 = vpack.c.bf16 %v4995_v1, %v4995_v1 }
 0x2f8   :  { %3261 = vmatprep.subr.bf16.mxu0 %v4585_v16  ;;  %3343 = vmatprep.subr.bf16.mxu1 %v4588_v17  ;;  %v4664_v13 = vld [vmem:[#allocation9 + $0x3c8] ss:$16 sps:$4 sm:$0xff]   ;;  %v4669_v14 = vld [vmem:[#allocation9 + $0x3e4] ss:$16 sps:$4 sm:$0xff]   ;;  %v4672_v15 = vld [vmem:[#allocation9 + $0x3ec] ss:$16 sps:$4 sm:$0xff]  }
 0x2f9   :  { %v4667_v16 = vld [vmem:[#allocation9 + $0x3e0] ss:$16 sps:$4 sm:$0xff]   ;;  %v4670_v17 = vld [vmem:[#allocation9 + $0x3e8] ss:$16 sps:$4 sm:$0xff]  }
 0x2fa   :  { %3262 = vmatpush1.bf16.msra.mxu0 %v4583_v19  ;;  %3344 = vmatpush1.bf16.msra.mxu1 %v4586_v20  ;;  %v2556_v19 = vld [vmem:[%s5062_s6] sm:$0xf]  ;;  %s4843_s6 = smov [#allocation12]  }
 0x2fb   :  { %3263 = vmatprep.subr.bf16.mxu0 %v4591_v21  ;;  %3345 = vmatprep.subr.bf16.mxu1 %v4594_v22  ;;  %v2561_v20 = vrot.slane %v2556_v19, %v4968_v2  ;;  %v2569_v21 = vrot.slane %v2556_v19, %v4970_v3  ;;  %v2565_v22 = vrot.slane %v2556_v19, %v4975_v5 }
 0x2fe   :  { %3264 = vmatpush1.bf16.msra.mxu0 %v4589_v23  ;;  %3346 = vmatpush1.bf16.msra.mxu1 %v4592_v24  ;;  %v2573_v23 = vrot.slane %v2556_v19, %v4977_v6  ;;  %v3394_v24 = vld [vmem:[%s5063_s7] sm:$0xf]  ;;  %s3494_s7 = sshll.u32 %s4843_s6, 4  ;;  %s3495_s7 = int_to_ptr.vmem [resolvable:$true] %s3494_s7 }
 0x2ff   :  { %3265 = vmatprep.subr.bf16.mxu0 %v4597_v25  ;;  %3347 = vmatprep.subr.bf16.mxu1 %v4600_v27  ;;  %s4761_s0 = scalar_lea.vmem %s3495_s7, 256  ;;  %p4766_p5 = scmp.lt.s32.totalorder %s3495_s7, %s3495_s7 }
 0x300   :  { %p4762_p4 = scmp.ne.s32.totalorder %s3495_s7, %s4761_s0  ;;  %p4767_p6 = scmp.lt.s32.totalorder %s4761_s0, %s4761_s0 }
 0x302   :  { %3266 = vmatpush1.bf16.msra.mxu0 %v4595_v28  ;;  %3348 = vmatpush1.bf16.msra.mxu1 %v4598_v29  ;;  %p4768_p7 = por %p4767_p6, %p4766_p5 }
 0x303   :  { %3267 = vmatprep.subr.bf16.mxu0 %v4603_v30  ;;  %3349 = vmatprep.subr.bf16.mxu1 %v4606_v31 }
 0x304   :  { %p4769_p8 = pnand %p4768_p7, %p4762_p4 }
 0x306   :  { %3268 = vmatpush1.bf16.msra.mxu0 %v4601_v32  ;;  %3350 = vmatpush1.bf16.msra.mxu1 %v4604_v33 }
 0x307   :  { %3269 = vmatprep.subr.bf16.mxu0 %v4609_v34  ;;  %3351 = vmatprep.subr.bf16.mxu1 %v4612_v35  ;;  %v3399_v35 = vrot.slane %v3394_v24, %v4968_v2 }
 0x30a   :  { %3270 = vmatpush1.bf16.msra.mxu0 %v4607_v36  ;;  %3352 = vmatpush1.bf16.msra.mxu1 %v4610_v37  ;;  %v3403_v36 = vrot.slane %v3394_v24, %v4975_v5  ;;  %v3411_v5 = vrot.slane %v3394_v24, %v4977_v6 }
 0x30b   :  { %3271 = vmatprep.subr.bf16.mxu0 %v4615_v38  ;;  %3353 = vmatprep.subr.bf16.mxu1 %v4618_v39 }
 0x30e   :  { %3272 = vmatpush1.bf16.msra.mxu0 %v4613_v40  ;;  %3354 = vmatpush1.bf16.msra.mxu1 %v4616_v41 }
 0x30f   :  { %3273 = vmatprep.subr.bf16.mxu0 %v4621_v42  ;;  %3355 = vmatprep.subr.bf16.mxu1 %v4624_v43 }
 0x312   :  { %3274 = vmatpush1.bf16.msra.mxu0 %v4619_v44  ;;  %3356 = vmatpush1.bf16.msra.mxu1 %v4622_v45  ;;  %v3407_v45 = vrot.slane %v3394_v24, %v4970_v3 }
 0x313   :  { %3275 = vmatprep.subr.bf16.mxu0 %v4627_v46  ;;  %3357 = vmatprep.subr.bf16.mxu1 %v4630_v47 }
 0x316   :  { %3276 = vmatpush1.bf16.msra.mxu0 %v4625_v48  ;;  %3358 = vmatpush1.bf16.msra.mxu1 %v4628_v49 }
 0x317   :  { %3277 = vmatprep.subr.bf16.mxu0 %v4633_v50  ;;  %3359 = vmatprep.subr.bf16.mxu1 %v4636_v51 }
 0x31a   :  { %3278 = vmatpush1.bf16.msra.mxu0 %v4631_v26  ;;  %3360 = vmatpush1.bf16.msra.mxu1 %v4634_v52 }
 0x31b   :  { %3279 = vmatprep.subr.bf16.mxu0 %v4639_v53  ;;  %3361 = vmatprep.subr.bf16.mxu1 %v4642_v54 }
 0x31e   :  { %3280 = vmatpush1.bf16.msra.mxu0 %v4637_v55  ;;  %3362 = vmatpush1.bf16.msra.mxu1 %v4640_v56 }
 0x31f   :  { %3281 = vmatprep.subr.bf16.mxu0 %v4645_v57  ;;  %3363 = vmatprep.subr.bf16.mxu1 %v4648_v58 }
 0x322   :  { %3282 = vmatpush1.bf16.msra.mxu0 %v4643_v59  ;;  %3364 = vmatpush1.bf16.msra.mxu1 %v4646_v60 }
 0x323   :  { %3283 = vmatprep.subr.bf16.mxu0 %v4651_v61  ;;  %3365 = vmatprep.subr.bf16.mxu1 %v4654_v62 }
 0x326   :  { %3284 = vmatpush1.bf16.msra.mxu0 %v4649_v63  ;;  %3366 = vmatpush1.bf16.msra.mxu1 %v4652_v0 }
 0x327   :  { %3285 = vmatprep.subr.bf16.mxu0 %v4657_v4  ;;  %3367 = vmatprep.subr.bf16.mxu1 %v4660_v7 }
 0x32a   :  { %3286 = vmatpush1.bf16.msra.mxu0 %v4655_v8  ;;  %3368 = vmatpush1.bf16.msra.mxu1 %v4658_v9 }
 0x32b   :  { %3287 = vmatprep.subr.bf16.mxu0 %v4663_v10  ;;  %3369 = vmatprep.subr.bf16.mxu1 %v4666_v11 }
 0x32e   :  { %3288 = vmatpush1.bf16.msra.mxu0 %v4661_v12  ;;  %3370 = vmatpush1.bf16.msra.mxu1 %v4664_v13 }
 0x32f   :  { %3289 = vmatprep.subr.bf16.mxu0 %v4669_v14  ;;  %3371 = vmatprep.subr.bf16.mxu1 %v4672_v15 }
 0x332   :  { %3290 = vmatpush1.bf16.msra.mxu0 %v4667_v16  ;;  %3372 = vmatpush1.bf16.msra.mxu1 %v4670_v17 }
 0x335   :  { %3292 = vmatmul.mubr.bf16.vlgmr.msra.gmra.mrb[8].mxu0 %v2426_v18  ;;  %3374 = vmatmul.mubr.bf16.vlgmr.msra.gmra.mrb[8].mxu1 %v2426_v18 }
 0x408   :  { %v3293_v25 = vpop.f32.mrb[8].mxu0  ;;  %v3375_v1 = vpop.f32.mrb[8].mxu1 }
 0x409   :  { %v3980_v27 = vadd.f32 %v3293_v25, %v2561_v20  ;;  %v3982_v28 = vadd.f32 %v3375_v1, %v2569_v21  ;;  %v3295_v29 = vpop.f32.mrb[9].mxu0  ;;  %v3377_v30 = vpop.f32.mrb[9].mxu1 }
 0x40a   :  { %v3981_v31 = vadd.f32 %v3295_v29, %v2565_v22  ;;  %v3983_v32 = vadd.f32 %v3377_v30, %v2573_v23  ;;  %v3297_v33 = vpop.f32.mrb[10].mxu0  ;;  %v3379_v34 = vpop.f32.mrb[10].mxu1 }
 0x40b   :  { %vm3382_vm10 = vcmp.ge.f32.partialorder %v3980_v27, 0.0  ;;  %v3386_v37 = vmul.f32 0.01, %v3980_v27  ;;  %vm3384_vm11 = vcmp.ge.f32.partialorder %v3982_v28, 0.0  ;;  %v3388_v38 = vmul.f32 0.01, %v3982_v28 }
 0x40c   :  { %vm3383_vm12 = vcmp.ge.f32.partialorder %v3981_v31, 0.0  ;;  %v3387_v39 = vmul.f32 0.01, %v3981_v31  ;;  %vm3385_vm13 = vcmp.ge.f32.partialorder %v3983_v32, 0.0  ;;  %v3389_v40 = vmul.f32 0.01, %v3983_v32 }
 0x40d   :  { %v3390_v41 = vsel %vm3382_vm10, %v3980_v27, %v3386_v37  ;;  %v3298_v42 = vpop.f32.mrb[11].mxu0  ;;  %v3380_v43 = vpop.f32.mrb[11].mxu1  ;;  %v3392_v44 = vsel %vm3384_vm11, %v3982_v28, %v3388_v38 }
 0x40e   :  { %v3391_v46 = vsel %vm3383_vm12, %v3981_v31, %v3387_v39  ;;  %v3393_v47 = vsel %vm3385_vm13, %v3983_v32, %v3389_v40  ;;  %v3416_v48 = vmul.f32 %v3399_v35, %v3390_v41  ;;  %v3418_v51 = vmul.f32 %v3407_v45, %v3392_v44 }
 0x40f   :  { %v3970_v2 = vpack.c.bf16 %v3391_v46, %v3390_v41  ;;  %v3417_v49 = vmul.f32 %v3403_v36, %v3391_v46  ;;  %v3971_v50 = vpack.c.bf16 %v3393_v47, %v3392_v44  ;;  %v3419_v52 = vmul.f32 %v3411_v5, %v3393_v47 }
 0x411   :  { %3474 = vst [vmem:[#allocation14] sm:$0xff] %v3970_v2  ;;  %v3420_v26 = vadd.f32 %v3417_v49, %v3416_v48  ;;  %3475 = vst [vmem:[#allocation14 + $0x8] sm:$0xff] %v3971_v50 }
 0x413   :  { %v3421_v53 = vadd.f32 %v3420_v26, %v3418_v51 }
 0x415   :  { %v3422_v54 = vadd.f32 %v3421_v53, %v3419_v52 }
 0x417   :  { %3423 = vadd.xlane.f32.xlu0 %v3422_v54 }
 0x418   :  { %4772 = shalt.err (!%p4769_p8)
}
 0x419   :  { %s4773_s26 = scalar_lea.hbm %s5067_s11, 256 }
 0x41a   :  { %p4774_p9 = scmp.ne.s32.totalorder %s5067_s11, %s4773_s26  ;;  %p4777_p10 = scmp.lt.u32.totalorder %s4773_s26, %s5067_s11 }
 0x41c   :  { %p4779_p11 = pnand %p4777_p10, %p4774_p9 }
 0x41e   :  { %4782 = shalt.err (!%p4779_p11)
}
 0x41f   :  { %3497 = dma.vmem_to_hbm [thread:$0]  %s3495_s7, 256, %s5067_s11, [#allocation13]  }
 0x420   :  { %s4783_s15 = scalar_lea.vmem %s3485_s24, 256  ;;  %p4788_p13 = scmp.lt.s32.totalorder %s3485_s24, %s3485_s24 }
 0x421   :  { %p4784_p12 = scmp.ne.s32.totalorder %s3485_s24, %s4783_s15  ;;  %p4789_p0 = scmp.lt.s32.totalorder %s4783_s15, %s4783_s15 }
 0x423   :  { %p4790_p1 = por %p4789_p0, %p4788_p13 }
 0x425   :  { %p4791_p2 = pnand %p4790_p1, %p4784_p12 }
 0x427   :  { %4794 = shalt.err (!%p4791_p2)
}
 0x428   :  { %s4795_s20 = scalar_lea.hbm %s5066_s10, 256 }
 0x429   :  { %p4796_p3 = scmp.ne.s32.totalorder %s5066_s10, %s4795_s20  ;;  %p4799_p4 = scmp.lt.u32.totalorder %s4795_s20, %s5066_s10 }
 0x42b   :  { %p4801_p5 = pnand %p4799_p4, %p4796_p3 }
 0x42d   :  { %4804 = shalt.err (!%p4801_p5)
}
 0x42e   :  { %3487 = dma.vmem_to_hbm [thread:$0]  %s3485_s24, 256, %s5066_s10, [#allocation5]  }
 0x42f   :  { %s4845_s17 = smov [#allocation14]  }
 0x430   :  { %s3504_s19 = sshll.u32 %s4845_s17, 4  ;;  %s3505_s19 = int_to_ptr.vmem [resolvable:$true] %s3504_s19 }
 0x431   :  { %s4805_s21 = scalar_lea.vmem %s3505_s19, 256  ;;  %p4810_p7 = scmp.lt.s32.totalorder %s3505_s19, %s3505_s19 }
 0x432   :  { %p4806_p6 = scmp.ne.s32.totalorder %s3505_s19, %s4805_s21  ;;  %p4811_p8 = scmp.lt.s32.totalorder %s4805_s21, %s4805_s21 }
 0x434   :  { %p4812_p9 = por %p4811_p8, %p4810_p7 }
 0x436   :  { %p4813_p10 = pnand %p4812_p9, %p4806_p6 }
 0x438   :  { %4816 = shalt.err (!%p4813_p10)
}
 0x439   :  { %s4817_s23 = scalar_lea.hbm %s5068_s12, 256 }
 0x43a   :  { %p4818_p11 = scmp.ne.s32.totalorder %s5068_s12, %s4817_s23  ;;  %p4821_p12 = scmp.lt.u32.totalorder %s4817_s23, %s5068_s12 }
 0x43c   :  { %p4823_p13 = pnand %p4821_p12, %p4818_p11 }
 0x43e   :  { %4826 = shalt.err (!%p4823_p13)
}
 0x43f   :  { %3507 = dma.vmem_to_hbm [thread:$0]  %s3505_s19, 256, %s5068_s12, [#allocation13]   ;;  %v3426_v3 = vstv %s5064_s8  ;;  %vm3428_vm14 = vcmask 7168  }
 0x4a4   :  { %v3424_v6 = vpop.xlane.xlu0 %3423 }
 0x4a5   :  { %v3427_v55 = vadd.f32 %v3426_v3, %v3424_v6 }
 0x4a7   :  { %3429 = vst.msk [vmem:[%s5065_s9] sm:$0xff] %vm3428_vm14, %v3427_v55 }
 0x4a8   :  { %4833 = dma.done.wait [#allocation5], 256  }
 0x4a9   :  { %4834 = vsyncadd [#allocation5], 4294967040 }
 0x4aa   :  { %4835 = dma.done.wait [#allocation13], 512  }
 0x4ab   :  { %4836 = vsyncadd [#allocation13], 4294966784 }
 0x4ac   :  { %3519 = vsyncpa [#allocation4], 1 }
 0x4ad   :  { %3520 = vsyncpa [#allocation7], 1 }
 0x4ae   :  { %3521 = vsyncpa [#allocation10], 1 }
 0x4af   :  { %3522 = vsyncpa [#allocation5], 1 }
 0x4b0   :  { %3523 = vsyncpa [#allocation13], 1 }

</bundles_post_ra>
